<compile_context>
chip_gen: v7x
topology: tpu7x:2x2x1
jax: 0.10.0
libtpu: 0.0.40
codegen_flags: <defaults>
</compile_context>

<pallas_src>
import functools

import jax
import jax.numpy as jnp
from jax.experimental import pallas as pl
from jax.experimental.pallas import tpu as pltpu

BERT_DIM = 384
LANE = 128


def _round_up(n, m):
    return ((n + m - 1) // m) * m


def _pad2(x, rows, cols):
    pr, pc = rows - x.shape[0], cols - x.shape[1]
    if pr == 0 and pc == 0:
        return x
    return jnp.pad(x, ((0, pr), (0, pc)))


def _vmem_limit_bytes(arrays):
    total = sum(int(a.size) * a.dtype.itemsize for a in arrays)
    # 2x for double-buffering headroom, capped at v7x's 64 MiB physical VMEM.
    return int(min(64 * 2**20, max(16 * 2**20, 2 * total + 4 * 2**20)))


# ----------------------------------------------------------------------------
# Kernel 1: batch-invariant GCN / DR2 subgraph -> folded (1, K) bias vectors.
# ----------------------------------------------------------------------------
def _knowledge_kernel(
    kv_ref, bert_ref, adj1_ref, adj2_ref,
    dr2_wx_ref, dr2_wb_ref, dr2_wk_ref, dr2_b_ref,
    gc1_w_ref, gc1_b_ref, gc2_w_ref, gc2_b_ref,
    pf4_wk_ref, pf4_b_ref, pf5_wk_ref, pf5_b_ref,
    bias4_ref, bias5_ref, *, k_n, compute_dtype,
):
    f32 = jnp.float32

    def mm(a, b):  # MXU matmul with f32 accumulation; operands in compute_dtype
        return jnp.dot(a.astype(compute_dtype), b.astype(compute_dtype),
                       preferred_element_type=f32)

    kv = kv_ref[...]                                   # (K, E) padded
    # constant part of DR2(cat(x, Bert, k_v)) = Bert@Wb + k_v@Wk + b
    dr2_base = mm(bert_ref[...], dr2_wb_ref[...]) + mm(kv, dr2_wk_ref[...]) + dr2_b_ref[...]

    def dr2(x):
        return jnp.tanh(mm(x, dr2_wx_ref[...]) + dr2_base)

    def gcn_relu(x, adj_ref, w_ref, b_ref):
        support = mm(x, w_ref[...])
        return jax.nn.relu(mm(adj_ref[...], support) + b_ref[...])

    x0 = dr2(kv)
    x1 = dr2(gcn_relu(x0, adj1_ref, gc1_w_ref, gc1_b_ref))
    x2 = dr2(gcn_relu(x1, adj2_ref, gc2_w_ref, gc2_b_ref))

    # Mask the zero-padded knowledge rows out of the reduction.
    row = jax.lax.broadcasted_iota(jnp.int32, x2.shape, 0)
    x2 = jnp.where(row < k_n, x2, 0.0)
    kn = jax.nn.sigmoid(jnp.sum(x2, axis=0, keepdims=True) / float(k_n))   # (1, E)

    # Fold the batch-invariant kn contribution of prednet_full4/5 into biases.
    bias4_ref[...] = mm(kn, pf4_wk_ref[...]) + pf4_b_ref[...]
    bias5_ref[...] = mm(kn, pf5_wk_ref[...]) + pf5_b_ref[...]


def knowledge_biases(params, *, compute_dtype=jnp.float32):
    """Batch-invariant part of the forward pass; result is cacheable."""
    kv = params["knowledge_v"]
    k_n, emb = kv.shape
    E = _round_up(emb, LANE)
    K = _round_up(k_n, LANE)
    D = _round_up(BERT_DIM, LANE)
    wd = compute_dtype  # matmul-operand dtype (pre-cast to cut DMA traffic)

    inputs = (
        _pad2(kv, K, E).astype(wd),
        _pad2(params["bert"], K, D).astype(wd),
        _pad2(params["adj1"], K, K).astype(wd),
        _pad2(params["adj2"], K, K).astype(wd),
        _pad2(params["dr2_wx"], E, E).astype(wd),
        _pad2(params["dr2_wb"], D, E).astype(wd),
        _pad2(params["dr2_wk"], E, E).astype(wd),
        _pad2(params["dr2_b"], 1, E),
        _pad2(params["gc1_w"], E, E).astype(wd),
        _pad2(params["gc1_b"], 1, E),
        _pad2(params["gc2_w"], E, E).astype(wd),
        _pad2(params["gc2_b"], 1, E),
        _pad2(params["pf4_wk"], E, K).astype(wd),
        _pad2(params["pf4_b"], 1, K),
        _pad2(params["pf5_wk"], E, K).astype(wd),
        _pad2(params["pf5_b"], 1, K),
    )
    bias4, bias5 = pl.pallas_call(
        functools.partial(_knowledge_kernel, k_n=k_n, compute_dtype=compute_dtype),
        out_shape=(jax.ShapeDtypeStruct((1, K), jnp.float32),
                   jax.ShapeDtypeStruct((1, K), jnp.float32)),
        in_specs=[pl.BlockSpec(memory_space=pltpu.MemorySpace.VMEM)] * len(inputs),
        out_specs=(pl.BlockSpec(memory_space=pltpu.MemorySpace.VMEM),
                   pl.BlockSpec(memory_space=pltpu.MemorySpace.VMEM)),
        compiler_params=pltpu.CompilerParams(
            vmem_limit_bytes=_vmem_limit_bytes(inputs)),
    )(*inputs)
    return bias4, bias5


# ----------------------------------------------------------------------------
# Kernel 2: batched prediction MLP, gridded over B.
# ----------------------------------------------------------------------------
def _prediction_kernel(
    stu_ref, exer_ref, kq_ref, bias4_ref, bias5_ref,
    pf4_ws_ref, pf5_we_ref,
    pf1_w_ref, pf1_b_ref, pf2_w_ref, pf2_b_ref, pf3_w_ref, pf3_b_ref,
    out_ref, *, compute_dtype,
):
    f32 = jnp.float32

    def mm(a, b):
        return jnp.dot(a.astype(compute_dtype), b.astype(compute_dtype),
                       preferred_element_type=f32)

    preference = jax.nn.sigmoid(mm(stu_ref[...], pf4_ws_ref[...]) + bias4_ref[...])
    diff = jax.nn.sigmoid(mm(exer_ref[...], pf5_we_ref[...]) + bias5_ref[...])
    x = (preference - diff) * kq_ref[...]

    # TODO(synk): nn.Dropout(p=0.5) is stochastic in train mode; eval identity here.
    # PosLinear weights (2*relu(-W)+W == |W|) are precomputed in the wrapper.
    h1 = jax.nn.sigmoid(mm(x, pf1_w_ref[...]) + pf1_b_ref[...])
    h2 = jax.nn.sigmoid(mm(h1, pf2_w_ref[...]) + pf2_b_ref[...])

    # Final PosLinear(128 -> 1): VPU dot-reduce, not a lane-starved N=1 MXU matmul.
    logit = jnp.sum(h2 * pf3_w_ref[...], axis=-1, keepdims=True) + pf3_b_ref[...]
    out_ref[...] = jax.nn.sigmoid(logit)


def net_forward(params, stu_id, exer_id, kq, *, tile_b=128,
                compute_dtype=jnp.float32, kn_biases=None):
    # Embedding gathers stay outside the kernel (glue).
    if kn_biases is None:
        kn_biases = knowledge_biases(params, compute_dtype=compute_dtype)
    bias4, bias5 = kn_biases

    stu_v = jnp.take(params["student_v"], stu_id, axis=0)
    exer_v = jnp.take(params["exercise_v"], exer_id, axis=0)
    B, emb = stu_v.shape
    k_n = kq.shape[1]
    E = _round_up(emb, LANE)
    K = _round_up(k_n, LANE)
    Bp = _round_up(B, tile_b)          # tile_b: 128 (v5e) ... 256-512 (v7x)
    nb = Bp // tile_b
    wd = compute_dtype

    pos = lambda w: 2.0 * jax.nn.relu(-w) + w    # PosLinear transform, hoisted
    inputs = (
        _pad2(stu_v, Bp, E),
        _pad2(exer_v, Bp, E),
        _pad2(kq, Bp, K),
        bias4, bias5,
        _pad2(params["pf4_ws"], E, K).astype(wd),
        _pad2(params["pf5_we"], E, K).astype(wd),
        _pad2(pos(params["pf1_w"]), K, 256).astype(wd),
        _pad2(params["pf1_b"], 1, 256),
        pos(params["pf2_w"]).astype(wd),          # (256, 128), already aligned
        params["pf2_b"],                          # (1, 128)
        pos(params["pf3_w"]).reshape(1, -1),      # (1, 128) row, kept f32
        params["pf3_b"],                          # (1, 1)
    )

    resident = lambda shape: pl.BlockSpec(shape, lambda i: (0, 0))
    in_specs = [
        pl.BlockSpec((tile_b, E), lambda i: (i, 0)),
        pl.BlockSpec((tile_b, E), lambda i: (i, 0)),
        pl.BlockSpec((tile_b, K), lambda i: (i, 0)),
        resident((1, K)), resident((1, K)),
        resident((E, K)), resident((E, K)),
        resident((K, 256)), resident((1, 256)),
        resident((256, 128)), resident((1, 128)),
        resident((1, 128)), resident((1, 1)),
    ]

    out = pl.pallas_call(
        functools.partial(_prediction_kernel, compute_dtype=compute_dtype),
        out_shape=jax.ShapeDtypeStruct((Bp, 1), jnp.float32),
        grid=(nb,),
        in_specs=in_specs,
        out_specs=pl.BlockSpec((tile_b, 1), lambda i: (i, 0)),
        compiler_params=pltpu.CompilerParams(
            dimension_semantics=("parallel",),
            vmem_limit_bytes=_vmem_limit_bytes(inputs)),
    )(*inputs)
    return out[:B, 0]


# ----------------------------------------------------------------------------
# Pure-JAX reference and parameter construction.
# ----------------------------------------------------------------------------
def net_forward_ref(params, stu_id, exer_id, kq):
    stu_v = jnp.take(params["student_v"], stu_id, axis=0)
    exer_v = jnp.take(params["exercise_v"], exer_id, axis=0)
    kv = params["knowledge_v"]
    bert = params["bert"]
    k_n = kv.shape[0]

    dr2_base = bert @ params["dr2_wb"] + kv @ params["dr2_wk"] + params["dr2_b"]
    dr2 = lambda x: jnp.tanh(x @ params["dr2_wx"] + dr2_base)
    gcn = lambda x, a, w, b: jax.nn.relu(a @ (x @ w) + b)

    x0 = dr2(kv)
    x1 = dr2(gcn(x0, params["adj1"], params["gc1_w"], params["gc1_b"]))
    x2 = dr2(gcn(x1, params["adj2"], params["gc2_w"], params["gc2_b"]))
    kn = jax.nn.sigmoid(jnp.sum(x2, axis=0, keepdims=True) / float(k_n))

    pref = jax.nn.sigmoid(stu_v @ params["pf4_ws"] + kn @ params["pf4_wk"] + params["pf4_b"])
    diff = jax.nn.sigmoid(exer_v @ params["pf5_we"] + kn @ params["pf5_wk"] + params["pf5_b"])
    x = (pref - diff) * kq
    pos = lambda x, w, b: x @ (2.0 * jax.nn.relu(-w) + w) + b
    x = jax.nn.sigmoid(pos(x, params["pf1_w"], params["pf1_b"]))
    x = jax.nn.sigmoid(pos(x, params["pf2_w"], params["pf2_b"]))
    x = jax.nn.sigmoid(pos(x, params["pf3_w"], params["pf3_b"]))
    return x.reshape(-1)


def init_params(key, stu_n, exer_n, k_n, emb_dim):
    ks = iter(jax.random.split(key, 32))

    def xavier(k, shape, fan_in, fan_out):
        std = (2.0 / (fan_in + fan_out)) ** 0.5
        return (std * jax.random.normal(k, shape)).astype(jnp.float32)

    def bias(k, n):
        return (0.01 * jax.random.normal(k, (1, n))).astype(jnp.float32)

    p = {}
    p["student_v"] = xavier(next(ks), (stu_n, emb_dim), emb_dim, stu_n)
    p["exercise_v"] = xavier(next(ks), (exer_n, emb_dim), emb_dim, exer_n)
    p["knowledge_v"] = xavier(next(ks), (k_n, emb_dim), emb_dim, k_n)

    # DR2: Linear(2*emb + 384 -> emb), stored (in, out), split into x/bert/k_v parts
    dr2_in = 2 * emb_dim + BERT_DIM
    dr2_w = xavier(next(ks), (dr2_in, emb_dim), dr2_in, emb_dim)
    p["dr2_wx"] = dr2_w[:emb_dim]
    p["dr2_wb"] = dr2_w[emb_dim:emb_dim + BERT_DIM]
    p["dr2_wk"] = dr2_w[emb_dim + BERT_DIM:]
    p["dr2_b"] = bias(next(ks), emb_dim)

    # GraphConvolution layers (emb -> emb)
    p["gc1_w"] = xavier(next(ks), (emb_dim, emb_dim), emb_dim, emb_dim)
    p["gc1_b"] = bias(next(ks), emb_dim)
    p["gc2_w"] = xavier(next(ks), (emb_dim, emb_dim), emb_dim, emb_dim)
    p["gc2_b"] = bias(next(ks), emb_dim)

    # prednet_full4 / 5: Linear(2*emb -> k_n), split into stu/exer part and kn part
    pf4_w = xavier(next(ks), (2 * emb_dim, k_n), 2 * emb_dim, k_n)
    p["pf4_ws"], p["pf4_wk"] = pf4_w[:emb_dim], pf4_w[emb_dim:]
    p["pf4_b"] = bias(next(ks), k_n)
    pf5_w = xavier(next(ks), (2 * emb_dim, k_n), 2 * emb_dim, k_n)
    p["pf5_we"], p["pf5_wk"] = pf5_w[:emb_dim], pf5_w[emb_dim:]
    p["pf5_b"] = bias(next(ks), k_n)

    # PosLinear stack: k_n -> 256 -> 128 -> 1
    p["pf1_w"] = xavier(next(ks), (k_n, 256), k_n, 256)
    p["pf1_b"] = bias(next(ks), 256)
    p["pf2_w"] = xavier(next(ks), (256, 128), 256, 128)
    p["pf2_b"] = bias(next(ks), 128)
    p["pf3_w"] = xavier(next(ks), (128, 1), 128, 1)
    p["pf3_b"] = bias(next(ks), 1)

    # Module buffers (adjNT, adjTA, BERT_emb) — synthetic, deterministic
    p["adj1"] = (jax.random.uniform(next(ks), (k_n, k_n)) / k_n).astype(jnp.float32)
    p["adj2"] = (jax.random.uniform(next(ks), (k_n, k_n)) / k_n).astype(jnp.float32)
    p["bert"] = jax.random.normal(next(ks), (k_n, BERT_DIM)).astype(jnp.float32)
    return p


if __name__ == "__main__":
    # (stu_n, exer_n, k_n, emb_dim, B): toy shapes + an unaligned multi-tile case.
    configs = [
        (8, 8, 16, 16, 4),
        (50, 60, 40, 24, 300),
    ]
    key = jax.random.PRNGKey(0)
    for stu_n, exer_n, k_n, emb_dim, B in configs:
        key, pkey, k1, k2, k3 = jax.random.split(key, 5)
        params = init_params(pkey, stu_n, exer_n, k_n, emb_dim)
        stu_id = jax.random.randint(k1, (B,), 0, stu_n)
        exer_id = jax.random.randint(k2, (B,), 0, exer_n)
        kq = (jax.random.uniform(k3, (B, k_n)) > 0.5).astype(jnp.float32)

        ref = net_forward_ref(params, stu_id, exer_id, kq)

        # f32 path
        out = net_forward(params, stu_id, exer_id, kq, compute_dtype=jnp.float32)
        jax.block_until_ready(out)
        assert out.shape == (B,)
        assert jnp.allclose(out, ref, atol=1e-4, rtol=1e-4), \
            float(jnp.max(jnp.abs(out - ref)))

        # bf16 matmul-operand path (v6e/v7x MXU rate); looser tolerance per review.
        out_bf16 = net_forward(params, stu_id, exer_id, kq, compute_dtype=jnp.bfloat16)
        jax.block_until_ready(out_bf16)
        assert jnp.allclose(out_bf16, ref, atol=1e-1, rtol=1e-1)

        # Demonstrate caching the batch-invariant knowledge biases across calls.
        cached = knowledge_biases(params)
        out_cached = net_forward(params, stu_id, exer_id, kq, kn_biases=cached)
        jax.block_until_ready(out_cached)
        assert jnp.allclose(out_cached, ref, atol=1e-4, rtol=1e-4)

    print("KERNEL_OK")
</pallas_src>

<mosaic_0001>
module attributes {stable_mosaic.version = 11 : i64} {
  func.func @_knowledge_kernel(%arg0: memref<128x128xf32, #tpu.memory_space<vmem>>, %arg1: memref<128x384xf32, #tpu.memory_space<vmem>>, %arg2: memref<128x128xf32, #tpu.memory_space<vmem>>, %arg3: memref<128x128xf32, #tpu.memory_space<vmem>>, %arg4: memref<128x128xf32, #tpu.memory_space<vmem>>, %arg5: memref<384x128xf32, #tpu.memory_space<vmem>>, %arg6: memref<128x128xf32, #tpu.memory_space<vmem>>, %arg7: memref<1x128xf32, #tpu.memory_space<vmem>>, %arg8: memref<128x128xf32, #tpu.memory_space<vmem>>, %arg9: memref<1x128xf32, #tpu.memory_space<vmem>>, %arg10: memref<128x128xf32, #tpu.memory_space<vmem>>, %arg11: memref<1x128xf32, #tpu.memory_space<vmem>>, %arg12: memref<128x128xf32, #tpu.memory_space<vmem>>, %arg13: memref<1x128xf32, #tpu.memory_space<vmem>>, %arg14: memref<128x128xf32, #tpu.memory_space<vmem>>, %arg15: memref<1x128xf32, #tpu.memory_space<vmem>>, %arg16: memref<1x128xf32, #tpu.memory_space<vmem>>, %arg17: memref<1x128xf32, #tpu.memory_space<vmem>>) attributes {dimension_semantics = [], scalar_prefetch = 0 : i64, scratch_operands = 0 : i64, tpu.core_type = #tpu.core_type<tc>} {
    %c0 = arith.constant 0 : index
    %c0_0 = arith.constant 0 : index
    %0 = vector.load %arg0[%c0, %c0_0] : memref<128x128xf32, #tpu.memory_space<vmem>>, vector<128x128xf32>
    %c0_1 = arith.constant 0 : index
    %c0_2 = arith.constant 0 : index
    %1 = vector.load %arg1[%c0_1, %c0_2] : memref<128x384xf32, #tpu.memory_space<vmem>>, vector<128x384xf32>
    %c0_3 = arith.constant 0 : index
    %c0_4 = arith.constant 0 : index
    %2 = vector.load %arg5[%c0_3, %c0_4] : memref<384x128xf32, #tpu.memory_space<vmem>>, vector<384x128xf32>
    %cst = arith.constant dense<0.000000e+00> : vector<128x128xf32>
    %3 = tpu.matmul %1, %2, %cst {dimension_numbers = #tpu.dot_dimension_numbers<[1], [0], [0], [1], [0, 0, 1, 1], [], []>} : vector<128x384xf32>, vector<384x128xf32>, vector<128x128xf32> -> vector<128x128xf32>
    %c0_5 = arith.constant 0 : index
    %c0_6 = arith.constant 0 : index
    %4 = vector.load %arg6[%c0_5, %c0_6] : memref<128x128xf32, #tpu.memory_space<vmem>>, vector<128x128xf32>
    %cst_7 = arith.constant dense<0.000000e+00> : vector<128x128xf32>
    %5 = tpu.matmul %0, %4, %cst_7 {dimension_numbers = #tpu.dot_dimension_numbers<[1], [0], [0], [1], [0, 0, 1, 1], [], []>} : vector<128x128xf32>, vector<128x128xf32>, vector<128x128xf32> -> vector<128x128xf32>
    %6 = arith.addf %3, %5 : vector<128x128xf32>
    %c0_8 = arith.constant 0 : index
    %c0_9 = arith.constant 0 : index
    %7 = vector.load %arg7[%c0_8, %c0_9] : memref<1x128xf32, #tpu.memory_space<vmem>>, vector<1x128xf32>
    %8 = vector.broadcast %7 : vector<1x128xf32> to vector<128x128xf32>
    %9 = arith.addf %6, %8 : vector<128x128xf32>
    %c0_10 = arith.constant 0 : index
    %c0_11 = arith.constant 0 : index
    %10 = vector.load %arg4[%c0_10, %c0_11] : memref<128x128xf32, #tpu.memory_space<vmem>>, vector<128x128xf32>
    %cst_12 = arith.constant dense<0.000000e+00> : vector<128x128xf32>
    %11 = tpu.matmul %0, %10, %cst_12 {dimension_numbers = #tpu.dot_dimension_numbers<[1], [0], [0], [1], [0, 0, 1, 1], [], []>} : vector<128x128xf32>, vector<128x128xf32>, vector<128x128xf32> -> vector<128x128xf32>
    %12 = arith.addf %11, %9 : vector<128x128xf32>
    %13 = math.tanh %12 : vector<128x128xf32>
    %c0_13 = arith.constant 0 : index
    %c0_14 = arith.constant 0 : index
    %14 = vector.load %arg8[%c0_13, %c0_14] : memref<128x128xf32, #tpu.memory_space<vmem>>, vector<128x128xf32>
    %cst_15 = arith.constant dense<0.000000e+00> : vector<128x128xf32>
    %15 = tpu.matmul %13, %14, %cst_15 {dimension_numbers = #tpu.dot_dimension_numbers<[1], [0], [0], [1], [0, 0, 1, 1], [], []>} : vector<128x128xf32>, vector<128x128xf32>, vector<128x128xf32> -> vector<128x128xf32>
    %c0_16 = arith.constant 0 : index
    %c0_17 = arith.constant 0 : index
    %16 = vector.load %arg2[%c0_16, %c0_17] : memref<128x128xf32, #tpu.memory_space<vmem>>, vector<128x128xf32>
    %cst_18 = arith.constant dense<0.000000e+00> : vector<128x128xf32>
    %17 = tpu.matmul %16, %15, %cst_18 {dimension_numbers = #tpu.dot_dimension_numbers<[1], [0], [0], [1], [0, 0, 1, 1], [], []>} : vector<128x128xf32>, vector<128x128xf32>, vector<128x128xf32> -> vector<128x128xf32>
    %c0_19 = arith.constant 0 : index
    %c0_20 = arith.constant 0 : index
    %18 = vector.load %arg9[%c0_19, %c0_20] : memref<1x128xf32, #tpu.memory_space<vmem>>, vector<1x128xf32>
    %19 = vector.broadcast %18 : vector<1x128xf32> to vector<128x128xf32>
    %20 = arith.addf %17, %19 : vector<128x128xf32>
    %cst_21 = arith.constant 0.000000e+00 : f32
    %21 = vector.broadcast %cst_21 : f32 to vector<128x128xf32>
    %22 = arith.maximumf %20, %21 : vector<128x128xf32>
    %c0_22 = arith.constant 0 : index
    %c0_23 = arith.constant 0 : index
    %23 = vector.load %arg4[%c0_22, %c0_23] : memref<128x128xf32, #tpu.memory_space<vmem>>, vector<128x128xf32>
    %cst_24 = arith.constant dense<0.000000e+00> : vector<128x128xf32>
    %24 = tpu.matmul %22, %23, %cst_24 {dimension_numbers = #tpu.dot_dimension_numbers<[1], [0], [0], [1], [0, 0, 1, 1], [], []>} : vector<128x128xf32>, vector<128x128xf32>, vector<128x128xf32> -> vector<128x128xf32>
    %25 = arith.addf %24, %9 : vector<128x128xf32>
    %26 = math.tanh %25 : vector<128x128xf32>
    %c0_25 = arith.constant 0 : index
    %c0_26 = arith.constant 0 : index
    %27 = vector.load %arg10[%c0_25, %c0_26] : memref<128x128xf32, #tpu.memory_space<vmem>>, vector<128x128xf32>
    %cst_27 = arith.constant dense<0.000000e+00> : vector<128x128xf32>
    %28 = tpu.matmul %26, %27, %cst_27 {dimension_numbers = #tpu.dot_dimension_numbers<[1], [0], [0], [1], [0, 0, 1, 1], [], []>} : vector<128x128xf32>, vector<128x128xf32>, vector<128x128xf32> -> vector<128x128xf32>
    %c0_28 = arith.constant 0 : index
    %c0_29 = arith.constant 0 : index
    %29 = vector.load %arg3[%c0_28, %c0_29] : memref<128x128xf32, #tpu.memory_space<vmem>>, vector<128x128xf32>
    %cst_30 = arith.constant dense<0.000000e+00> : vector<128x128xf32>
    %30 = tpu.matmul %29, %28, %cst_30 {dimension_numbers = #tpu.dot_dimension_numbers<[1], [0], [0], [1], [0, 0, 1, 1], [], []>} : vector<128x128xf32>, vector<128x128xf32>, vector<128x128xf32> -> vector<128x128xf32>
    %c0_31 = arith.constant 0 : index
    %c0_32 = arith.constant 0 : index
    %31 = vector.load %arg11[%c0_31, %c0_32] : memref<1x128xf32, #tpu.memory_space<vmem>>, vector<1x128xf32>
    %32 = vector.broadcast %31 : vector<1x128xf32> to vector<128x128xf32>
    %33 = arith.addf %30, %32 : vector<128x128xf32>
    %cst_33 = arith.constant 0.000000e+00 : f32
    %34 = vector.broadcast %cst_33 : f32 to vector<128x128xf32>
    %35 = arith.maximumf %33, %34 : vector<128x128xf32>
    %c0_34 = arith.constant 0 : index
    %c0_35 = arith.constant 0 : index
    %36 = vector.load %arg4[%c0_34, %c0_35] : memref<128x128xf32, #tpu.memory_space<vmem>>, vector<128x128xf32>
    %cst_36 = arith.constant dense<0.000000e+00> : vector<128x128xf32>
    %37 = tpu.matmul %35, %36, %cst_36 {dimension_numbers = #tpu.dot_dimension_numbers<[1], [0], [0], [1], [0, 0, 1, 1], [], []>} : vector<128x128xf32>, vector<128x128xf32>, vector<128x128xf32> -> vector<128x128xf32>
    %38 = arith.addf %37, %9 : vector<128x128xf32>
    %39 = math.tanh %38 : vector<128x128xf32>
    %40 = tpu.iota {dimensions = array<i32: 0>} : vector<128x128xi32>
    %c16_i32 = arith.constant 16 : i32
    %41 = vector.broadcast %c16_i32 : i32 to vector<128x128xi32>
    %42 = arith.cmpi slt, %40, %41 : vector<128x128xi32>
    %cst_37 = arith.constant 0.000000e+00 : f32
    %43 = vector.broadcast %cst_37 : f32 to vector<128x128xf32>
    %44 = arith.select %42, %39, %43 : vector<128x128xi1>, vector<128x128xf32>
    %cst_38 = arith.constant dense<0.000000e+00> : vector<128xf32>
    %45 = vector.multi_reduction <add>, %44, %cst_38 [0] : vector<128x128xf32> to vector<128xf32>
    %46 = vector.shape_cast %45 : vector<128xf32> to vector<1x128xf32>
    %cst_39 = arith.constant 1.600000e+01 : f32
    %47 = vector.broadcast %cst_39 : f32 to vector<1x128xf32>
    %48 = arith.divf %46, %47 : vector<1x128xf32>
    %49 = arith.negf %48 : vector<1x128xf32>
    %50 = math.exp %49 : vector<1x128xf32>
    %cst_40 = arith.constant 1.000000e+00 : f32
    %51 = vector.broadcast %cst_40 : f32 to vector<1x128xf32>
    %52 = arith.addf %51, %50 : vector<1x128xf32>
    %53 = arith.divf %51, %52 : vector<1x128xf32>
    %c0_41 = arith.constant 0 : index
    %c0_42 = arith.constant 0 : index
    %54 = vector.load %arg12[%c0_41, %c0_42] : memref<128x128xf32, #tpu.memory_space<vmem>>, vector<128x128xf32>
    %cst_43 = arith.constant dense<0.000000e+00> : vector<1x128xf32>
    %55 = tpu.matmul %53, %54, %cst_43 {dimension_numbers = #tpu.dot_dimension_numbers<[1], [0], [0], [1], [0, 0, 1, 1], [], []>} : vector<1x128xf32>, vector<128x128xf32>, vector<1x128xf32> -> vector<1x128xf32>
    %c0_44 = arith.constant 0 : index
    %c0_45 = arith.constant 0 : index
    %56 = vector.load %arg13[%c0_44, %c0_45] : memref<1x128xf32, #tpu.memory_space<vmem>>, vector<1x128xf32>
    %57 = arith.addf %55, %56 : vector<1x128xf32>
    %c0_46 = arith.constant 0 : index
    %c0_47 = arith.constant 0 : index
    %58 = vector.load %arg16[%c0_46, %c0_47] : memref<1x128xf32, #tpu.memory_space<vmem>>, vector<1x128xf32>
    tpu.vector_store %arg16[%c0_46, %c0_47], %57 {strides = array<i32>} : memref<1x128xf32, #tpu.memory_space<vmem>>, vector<1x128xf32>,
    %c0_48 = arith.constant 0 : index
    %c0_49 = arith.constant 0 : index
    %59 = vector.load %arg14[%c0_48, %c0_49] : memref<128x128xf32, #tpu.memory_space<vmem>>, vector<128x128xf32>
    %cst_50 = arith.constant dense<0.000000e+00> : vector<1x128xf32>
    %60 = tpu.matmul %53, %59, %cst_50 {dimension_numbers = #tpu.dot_dimension_numbers<[1], [0], [0], [1], [0, 0, 1, 1], [], []>} : vector<1x128xf32>, vector<128x128xf32>, vector<1x128xf32> -> vector<1x128xf32>
    %c0_51 = arith.constant 0 : index
    %c0_52 = arith.constant 0 : index
    %61 = vector.load %arg15[%c0_51, %c0_52] : memref<1x128xf32, #tpu.memory_space<vmem>>, vector<1x128xf32>
    %62 = arith.addf %60, %61 : vector<1x128xf32>
    %c0_53 = arith.constant 0 : index
    %c0_54 = arith.constant 0 : index
    %63 = vector.load %arg17[%c0_53, %c0_54] : memref<1x128xf32, #tpu.memory_space<vmem>>, vector<1x128xf32>
    tpu.vector_store %arg17[%c0_53, %c0_54], %62 {strides = array<i32>} : memref<1x128xf32, #tpu.memory_space<vmem>>, vector<1x128xf32>,
    return
  }
}

</mosaic_0001>

<bundles_post_ra>
// kernel: tpu_custom_call.1
= control target key start
LH: loop header
LB: loop body
LE: loop exit
PB: predicated region body
PF: predicated region fallthrough
CT: control target
= control target key end

     0   :  { %s4626_s0 = inlined_call_operand.hbm [shape: f32[128,128], index: 0, kind: input, shape index: {}]   ;;  %s4627_s1 = inlined_call_operand.hbm [shape: f32[128,384], index: 1, kind: input, shape index: {}]   ;;  %s4628_s2 = inlined_call_operand.hbm [shape: f32[128,128], index: 2, kind: input, shape index: {}]   ;;  %s4629_s3 = inlined_call_operand.hbm [shape: f32[128,128], index: 3, kind: input, shape index: {}]   ;;  %s4630_s4 = inlined_call_operand.hbm [shape: f32[128,128], index: 4, kind: input, shape index: {}]   ;;  %s4631_s5 = inlined_call_operand.hbm [shape: f32[384,128], index: 5, kind: input, shape index: {}]   ;;  %s4632_s6 = inlined_call_operand.hbm [shape: f32[128,128], index: 6, kind: input, shape index: {}]   ;;  %s4633_s7 = inlined_call_operand.vmem [shape: f32[1,128], index: 7, kind: input, shape index: {}]   ;;  %s4634_s8 = inlined_call_operand.hbm [shape: f32[128,128], index: 8, kind: input, shape index: {}]   ;;  %s4635_s9 = inlined_call_operand.vmem [shape: f32[1,128], index: 9, kind: input, shape index: {}]   ;;  %s4636_s10 = inlined_call_operand.hbm [shape: f32[128,128], index: 10, kind: input, shape index: {}]   ;;  %s4637_s11 = inlined_call_operand.vmem [shape: f32[1,128], index: 11, kind: input, shape index: {}]   ;;  %s4638_s12 = inlined_call_operand.hbm [shape: f32[128,128], index: 12, kind: input, shape index: {}]   ;;  %s4639_s13 = inlined_call_operand.vmem [shape: f32[1,128], index: 13, kind: input, shape index: {}]   ;;  %s4640_s14 = inlined_call_operand.hbm [shape: f32[128,128], index: 14, kind: input, shape index: {}]   ;;  %s4641_s15 = inlined_call_operand.vmem [shape: f32[1,128], index: 15, kind: input, shape index: {}]   ;;  %s4642_s16 = inlined_call_operand.hbm [shape: f32[1,128], index: 16, kind: output, shape index: {0}]   ;;  %s4643_s17 = inlined_call_operand.hbm [shape: f32[1,128], index: 17, kind: output, shape index: {1}]  }
   0x1   :  { %4648 = sst [smem:[#allocation31_spill]] %s4626_s0 }
   0x2   :  { %4649 = sst [smem:[#allocation32_spill]] %s4627_s1 }
   0x3   :  { %4650 = sst [smem:[#allocation33_spill]] %s4642_s16 }
   0x4   :  { %4651 = sst [smem:[#allocation34_spill]] %s4643_s17 }
   0x5   :  { %23 = vsyncpa [#allocation3], 0 }
   0x6   :  { %24 = vsyncpa [#allocation6], 0 }
   0x7   :  { %25 = vsyncpa [#allocation9], 0 }
   0x8   :  { %26 = vsyncpa [#allocation12], 0 }
   0x9   :  { %27 = vsyncpa [#allocation15], 0 }
   0xa   :  { %28 = vsyncpa [#allocation18], 0 }
   0xb   :  { %29 = vsyncpa [#allocation4], 0 }
   0xc   :  { %30 = vsyncpa [#allocation22], 0  ;;  %s4043_s24 = smov [#allocation5]   ;;  %s4652_s28 = sld [smem:[#allocation32_spill]] }
   0xd   :  { %s48_s25 = sshll.u32 %s4043_s24, 4  ;;  %s49_s25 = int_to_ptr.vmem [resolvable:$true] %s48_s25 }
  0x12   :  { %s3741_s29 = scalar_lea.hbm %s4652_s28, 6144 }
  0x13   :  { %p3742_p0 = scmp.ne.s32.totalorder %s4652_s28, %s3741_s29  ;;  %p3745_p1 = scmp.lt.u32.totalorder %s3741_s29, %s4652_s28 }
  0x15   :  { %p3747_p2 = pnand %p3745_p1, %p3742_p0 }
  0x17   :  { %3750 = shalt.err (!%p3747_p2)
}
  0x18   :  { %s3751_s1 = scalar_lea.vmem %s49_s25, 6144  ;;  %p3756_p4 = scmp.lt.s32.totalorder %s49_s25, %s49_s25 }
  0x19   :  { %p3752_p3 = scmp.ne.s32.totalorder %s49_s25, %s3751_s1  ;;  %p3757_p5 = scmp.lt.s32.totalorder %s3751_s1, %s3751_s1 }
  0x1b   :  { %p3758_p6 = por %p3757_p5, %p3756_p4 }
  0x1d   :  { %p3759_p7 = pnand %p3758_p6, %p3752_p3 }
  0x1f   :  { %3762 = shalt.err (!%p3759_p7)
}
  0x20   :  { %s4044_s20 = smov 384   ;;  %s4045_s21 = smov 24  }
  0x21   :  { %54 = dma.hbm_to_vmem [thread:$0]  %s4652_s28, 6144, %s49_s25, [#allocation6], %s4044_s20, %s4044_s20, %s4045_s21  }
  0x22   :  { %s4046_s24 = smov [#allocation8]   ;;  %s4047_s27 = smov [#allocation11]  }
  0x23   :  { %s72_s26 = sshll.u32 %s4046_s24, 4  ;;  %s96_s29 = sshll.u32 %s4047_s27, 4  ;;  %s73_s26 = int_to_ptr.vmem [resolvable:$true] %s72_s26  ;;  %s97_s29 = int_to_ptr.vmem [resolvable:$true] %s96_s29 }
  0x24   :  { %s3763_s18 = scalar_lea.hbm %s4629_s3, 2048 }
  0x25   :  { %p3764_p8 = scmp.ne.s32.totalorder %s4629_s3, %s3763_s18  ;;  %p3767_p9 = scmp.lt.u32.totalorder %s3763_s18, %s4629_s3 }
  0x27   :  { %p3769_p10 = pnand %p3767_p9, %p3764_p8 }
  0x29   :  { %3772 = shalt.err (!%p3769_p10)
}
  0x2a   :  { %s3773_s25 = scalar_lea.vmem %s73_s26, 2048  ;;  %p3778_p12 = scmp.lt.s32.totalorder %s73_s26, %s73_s26 }
  0x2b   :  { %p3774_p11 = scmp.ne.s32.totalorder %s73_s26, %s3773_s25  ;;  %p3779_p13 = scmp.lt.s32.totalorder %s3773_s25, %s3773_s25 }
  0x2d   :  { %p3780_p0 = por %p3779_p13, %p3778_p12 }
  0x2f   :  { %p3781_p1 = pnand %p3780_p0, %p3774_p11 }
  0x31   :  { %3784 = shalt.err (!%p3781_p1)
}
  0x32   :  { %s4048_s28 = smov 128   ;;  %s4049_s20 = smov 8  }
  0x33   :  { %78 = dma.hbm_to_vmem [thread:$0]  %s4629_s3, 2048, %s73_s26, [#allocation9], %s4048_s28, %s4048_s28, %s4049_s20  }
  0x34   :  { %s3785_s23 = scalar_lea.hbm %s4631_s5, 6144 }
  0x35   :  { %p3786_p2 = scmp.ne.s32.totalorder %s4631_s5, %s3785_s23  ;;  %p3789_p3 = scmp.lt.u32.totalorder %s3785_s23, %s4631_s5 }
  0x37   :  { %p3791_p4 = pnand %p3789_p3, %p3786_p2 }
  0x39   :  { %3794 = shalt.err (!%p3791_p4)
}
  0x3a   :  { %s3795_s18 = scalar_lea.vmem %s97_s29, 6144  ;;  %p3800_p6 = scmp.lt.s32.totalorder %s97_s29, %s97_s29 }
  0x3b   :  { %p3796_p5 = scmp.ne.s32.totalorder %s97_s29, %s3795_s18  ;;  %p3801_p7 = scmp.lt.s32.totalorder %s3795_s18, %s3795_s18 }
  0x3d   :  { %p3802_p8 = por %p3801_p7, %p3800_p6 }
  0x3f   :  { %p3803_p9 = pnand %p3802_p8, %p3796_p5 }
  0x41   :  { %3806 = shalt.err (!%p3803_p9)
}
  0x42   :  { %102 = dma.hbm_to_vmem [thread:$0]  %s4631_s5, 6144, %s97_s29, [#allocation12], %s4048_s28, %s4048_s28, %s4049_s20  }
  0x43   :  { %s4050_s19 = smov [#allocation14]   ;;  %s4051_s25 = smov [#allocation17]  }
  0x44   :  { %s122_s1 = sshll.u32 %s4050_s19, 4  ;;  %s150_s21 = sshll.u32 %s4051_s25, 4  ;;  %s123_s1 = int_to_ptr.vmem [resolvable:$true] %s122_s1  ;;  %s151_s21 = int_to_ptr.vmem [resolvable:$true] %s150_s21 }
  0x45   :  { %s3807_s17 = scalar_lea.hbm %s4634_s8, 2048 }
  0x46   :  { %p3808_p10 = scmp.ne.s32.totalorder %s4634_s8, %s3807_s17  ;;  %p3811_p11 = scmp.lt.u32.totalorder %s3807_s17, %s4634_s8 }
  0x48   :  { %p3813_p12 = pnand %p3811_p11, %p3808_p10 }
  0x4a   :  { %3816 = shalt.err (!%p3813_p12)
}
  0x4b   :  { %s3817_s5 = scalar_lea.vmem %s123_s1, 2048  ;;  %p3822_p0 = scmp.lt.s32.totalorder %s123_s1, %s123_s1 }
  0x4c   :  { %p3818_p13 = scmp.ne.s32.totalorder %s123_s1, %s3817_s5  ;;  %p3823_p1 = scmp.lt.s32.totalorder %s3817_s5, %s3817_s5 }
  0x4e   :  { %p3824_p2 = por %p3823_p1, %p3822_p0 }
  0x50   :  { %p3825_p3 = pnand %p3824_p2, %p3818_p13 }
  0x52   :  { %3828 = shalt.err (!%p3825_p3)
}
  0x53   :  { %128 = dma.hbm_to_vmem [thread:$0]  %s4634_s8, 2048, %s123_s1, [#allocation15], %s4048_s28, %s4048_s28, %s4049_s20  }
  0x54   :  { %s3829_s26 = scalar_lea.hbm %s4638_s12, 2048 }
  0x55   :  { %p3830_p4 = scmp.ne.s32.totalorder %s4638_s12, %s3829_s26  ;;  %p3833_p5 = scmp.lt.u32.totalorder %s3829_s26, %s4638_s12 }
  0x57   :  { %p3835_p6 = pnand %p3833_p5, %p3830_p4 }
  0x59   :  { %3838 = shalt.err (!%p3835_p6)
}
  0x5a   :  { %s3839_s17 = scalar_lea.vmem %s151_s21, 2048  ;;  %p3844_p8 = scmp.lt.s32.totalorder %s151_s21, %s151_s21 }
  0x5b   :  { %p3840_p7 = scmp.ne.s32.totalorder %s151_s21, %s3839_s17  ;;  %p3845_p9 = scmp.lt.s32.totalorder %s3839_s17, %s3839_s17 }
  0x5d   :  { %p3846_p10 = por %p3845_p9, %p3844_p8 }
  0x5f   :  { %p3847_p11 = pnand %p3846_p10, %p3840_p7 }
  0x61   :  { %3850 = shalt.err (!%p3847_p11)
}
  0x62   :  { %156 = dma.hbm_to_vmem [thread:$0]  %s4638_s12, 2048, %s151_s21, [#allocation18], %s4048_s28, %s4048_s28, %s4049_s20  }
  0x63   :  { %s4052_s23 = smov [#allocation2]   ;;  %s4053_s27 = smov [#allocation7]  }
  0x64   :  { %s36_s24 = sshll.u32 %s4052_s23, 4  ;;  %s60_s0 = sshll.u32 %s4053_s27, 4  ;;  %s37_s24 = int_to_ptr.vmem [resolvable:$true] %s36_s24  ;;  %s61_s0 = int_to_ptr.vmem [resolvable:$true] %s60_s0 }
  0x65   :  { %s4653_s30 = sld [smem:[#allocation31_spill]] }
  0x6b   :  { %s3851_s18 = scalar_lea.hbm %s4653_s30, 2048 }
  0x6c   :  { %p3852_p12 = scmp.ne.s32.totalorder %s4653_s30, %s3851_s18  ;;  %p3855_p13 = scmp.lt.u32.totalorder %s3851_s18, %s4653_s30 }
  0x6e   :  { %p3857_p0 = pnand %p3855_p13, %p3852_p12 }
  0x70   :  { %3860 = shalt.err (!%p3857_p0)
}
  0x71   :  { %s3861_s12 = scalar_lea.vmem %s37_s24, 2048  ;;  %p3866_p2 = scmp.lt.s32.totalorder %s37_s24, %s37_s24 }
  0x72   :  { %p3862_p1 = scmp.ne.s32.totalorder %s37_s24, %s3861_s12  ;;  %p3867_p3 = scmp.lt.s32.totalorder %s3861_s12, %s3861_s12 }
  0x74   :  { %p3868_p4 = por %p3867_p3, %p3866_p2 }
  0x76   :  { %p3869_p5 = pnand %p3868_p4, %p3862_p1 }
  0x78   :  { %3872 = shalt.err (!%p3869_p5)
}
  0x79   :  { %42 = dma.hbm_to_vmem [thread:$0]  %s4653_s30, 2048, %s37_s24, [#allocation3], %s4048_s28, %s4048_s28, %s4049_s20  }
  0x7a   :  { %s3873_s8 = scalar_lea.hbm %s4628_s2, 2048 }
  0x7b   :  { %p3874_p6 = scmp.ne.s32.totalorder %s4628_s2, %s3873_s8  ;;  %p3877_p7 = scmp.lt.u32.totalorder %s3873_s8, %s4628_s2 }
  0x7d   :  { %p3879_p8 = pnand %p3877_p7, %p3874_p6 }
  0x7f   :  { %3882 = shalt.err (!%p3879_p8)
}
  0x80   :  { %s3883_s29 = scalar_lea.vmem %s61_s0, 2048  ;;  %p3888_p10 = scmp.lt.s32.totalorder %s61_s0, %s61_s0 }
  0x81   :  { %p3884_p9 = scmp.ne.s32.totalorder %s61_s0, %s3883_s29  ;;  %p3889_p11 = scmp.lt.s32.totalorder %s3883_s29, %s3883_s29 }
  0x83   :  { %p3890_p12 = por %p3889_p11, %p3888_p10 }
  0x85   :  { %p3891_p13 = pnand %p3890_p12, %p3884_p9 }
  0x87   :  { %3894 = shalt.err (!%p3891_p13)
}
  0x88   :  { %66 = dma.hbm_to_vmem [thread:$0]  %s4628_s2, 2048, %s61_s0, [#allocation6], %s4048_s28, %s4048_s28, %s4049_s20  }
  0x89   :  { %s4054_s18 = smov [#allocation10]   ;;  %s4055_s26 = smov [#allocation13]  }
  0x8a   :  { %s84_s3 = sshll.u32 %s4054_s18, 4  ;;  %s108_s19 = sshll.u32 %s4055_s26, 4  ;;  %s85_s3 = int_to_ptr.vmem [resolvable:$true] %s84_s3  ;;  %s109_s19 = int_to_ptr.vmem [resolvable:$true] %s108_s19 }
  0x8b   :  { %s3895_s21 = scalar_lea.hbm %s4630_s4, 2048 }
  0x8c   :  { %p3896_p0 = scmp.ne.s32.totalorder %s4630_s4, %s3895_s21  ;;  %p3899_p1 = scmp.lt.u32.totalorder %s3895_s21, %s4630_s4 }
  0x8e   :  { %p3901_p2 = pnand %p3899_p1, %p3896_p0 }
  0x90   :  { %3904 = shalt.err (!%p3901_p2)
}
  0x91   :  { %s3905_s2 = scalar_lea.vmem %s85_s3, 2048  ;;  %p3910_p4 = scmp.lt.s32.totalorder %s85_s3, %s85_s3 }
  0x92   :  { %p3906_p3 = scmp.ne.s32.totalorder %s85_s3, %s3905_s2  ;;  %p3911_p5 = scmp.lt.s32.totalorder %s3905_s2, %s3905_s2 }
  0x94   :  { %p3912_p6 = por %p3911_p5, %p3910_p4 }
  0x96   :  { %p3913_p7 = pnand %p3912_p6, %p3906_p3 }
  0x98   :  { %3916 = shalt.err (!%p3913_p7)
}
  0x99   :  { %90 = dma.hbm_to_vmem [thread:$0]  %s4630_s4, 2048, %s85_s3, [#allocation9], %s4048_s28, %s4048_s28, %s4049_s20  }
  0x9a   :  { %s3917_s5 = scalar_lea.hbm %s4632_s6, 2048 }
  0x9b   :  { %p3918_p8 = scmp.ne.s32.totalorder %s4632_s6, %s3917_s5  ;;  %p3921_p9 = scmp.lt.u32.totalorder %s3917_s5, %s4632_s6 }
  0x9d   :  { %p3923_p10 = pnand %p3921_p9, %p3918_p8 }
  0x9f   :  { %3926 = shalt.err (!%p3923_p10)
}
  0xa0   :  { %s3927_s26 = scalar_lea.vmem %s109_s19, 2048  ;;  %p3932_p12 = scmp.lt.s32.totalorder %s109_s19, %s109_s19 }
  0xa1   :  { %p3928_p11 = scmp.ne.s32.totalorder %s109_s19, %s3927_s26  ;;  %p3933_p13 = scmp.lt.s32.totalorder %s3927_s26, %s3927_s26 }
  0xa3   :  { %p3934_p0 = por %p3933_p13, %p3932_p12 }
  0xa5   :  { %p3935_p1 = pnand %p3934_p0, %p3928_p11 }
  0xa7   :  { %3938 = shalt.err (!%p3935_p1)
}
  0xa8   :  { %114 = dma.hbm_to_vmem [thread:$0]  %s4632_s6, 2048, %s109_s19, [#allocation12], %s4048_s28, %s4048_s28, %s4049_s20  }
  0xa9   :  { %s4056_s25 = smov [#allocation16]   ;;  %s4057_s21 = smov [#allocation19]  }
  0xaa   :  { %s136_s12 = sshll.u32 %s4056_s25, 4  ;;  %s164_s22 = sshll.u32 %s4057_s21, 4  ;;  %s137_s12 = int_to_ptr.vmem [resolvable:$true] %s136_s12  ;;  %s165_s22 = int_to_ptr.vmem [resolvable:$true] %s164_s22 }
  0xab   :  { %s3939_s8 = scalar_lea.hbm %s4636_s10, 2048 }
  0xac   :  { %p3940_p2 = scmp.ne.s32.totalorder %s4636_s10, %s3939_s8  ;;  %p3943_p3 = scmp.lt.u32.totalorder %s3939_s8, %s4636_s10 }
  0xae   :  { %p3945_p4 = pnand %p3943_p3, %p3940_p2 }
  0xb0   :  { %3948 = shalt.err (!%p3945_p4)
}
  0xb1   :  { %s3949_s6 = scalar_lea.vmem %s137_s12, 2048  ;;  %p3954_p6 = scmp.lt.s32.totalorder %s137_s12, %s137_s12 }
  0xb2   :  { %p3950_p5 = scmp.ne.s32.totalorder %s137_s12, %s3949_s6  ;;  %p3955_p7 = scmp.lt.s32.totalorder %s3949_s6, %s3949_s6 }
  0xb4   :  { %p3956_p8 = por %p3955_p7, %p3954_p6 }
  0xb6   :  { %p3957_p9 = pnand %p3956_p8, %p3950_p5 }
  0xb8   :  { %3960 = shalt.err (!%p3957_p9)
}
  0xb9   :  { %142 = dma.hbm_to_vmem [thread:$0]  %s4636_s10, 2048, %s137_s12, [#allocation15], %s4048_s28, %s4048_s28, %s4049_s20  }
  0xba   :  { %s3961_s24 = scalar_lea.hbm %s4640_s14, 2048 }
  0xbb   :  { %p3962_p10 = scmp.ne.s32.totalorder %s4640_s14, %s3961_s24  ;;  %p3965_p11 = scmp.lt.u32.totalorder %s3961_s24, %s4640_s14 }
  0xbd   :  { %p3967_p12 = pnand %p3965_p11, %p3962_p10 }
  0xbf   :  { %3970 = shalt.err (!%p3967_p12)
}
  0xc0   :  { %s3971_s3 = scalar_lea.vmem %s165_s22, 2048  ;;  %p3976_p0 = scmp.lt.s32.totalorder %s165_s22, %s165_s22 }
  0xc1   :  { %p3972_p13 = scmp.ne.s32.totalorder %s165_s22, %s3971_s3  ;;  %p3977_p1 = scmp.lt.s32.totalorder %s3971_s3, %s3971_s3 }
  0xc3   :  { %p3978_p2 = por %p3977_p1, %p3976_p0 }
  0xc5   :  { %p3979_p3 = pnand %p3978_p2, %p3972_p13 }
  0xc7   :  { %3982 = shalt.err (!%p3979_p3)
}
  0xc8   :  { %170 = dma.hbm_to_vmem [thread:$0]  %s4640_s14, 2048, %s165_s22, [#allocation18], %s4048_s28, %s4048_s28, %s4049_s20  }
  0xc9   :  { %4027 = dma.done.wait [#allocation3], 2048  }
  0xca   :  { %4028 = vsyncadd [#allocation3], 4294965248 }
  0xcb   :  { %4029 = dma.done.wait [#allocation6], 8192  }
  0xcc   :  { %4030 = vsyncadd [#allocation6], 4294959104 }
  0xcd   :  { %4031 = dma.done.wait [#allocation9], 4096  }
  0xce   :  { %4032 = vsyncadd [#allocation9], 4294963200 }
  0xcf   :  { %4033 = dma.done.wait [#allocation12], 8192  }
  0xd0   :  { %4034 = vsyncadd [#allocation12], 4294959104 }
  0xd1   :  { %4035 = dma.done.wait [#allocation15], 4096  }
  0xd2   :  { %4036 = vsyncadd [#allocation15], 4294963200 }
  0xd3   :  { %4037 = dma.done.wait [#allocation18], 4096  }
  0xd4   :  { %4038 = vsyncadd [#allocation18], 4294963200  ;;  %v318_v0 = vld [vmem:[#allocation13] sm:$0xff]  ;;  %v319_v1 = vld [vmem:[#allocation13 + $0x8] sm:$0xff]  ;;  %vm4059_vm0 = vmmov 0   ;;  %s4061_s17 = smov [#allocation20]  }
  0xd5   :  { %v286_v2 = vld [vmem:[#allocation11 + $0x80] sm:$0xff]  ;;  %v3249_v3 = vpack.c.bf16 %v319_v1, %v318_v0  ;;  %v287_v4 = vld [vmem:[#allocation11 + $0x88] sm:$0xff]  ;;  %v320_v9 = vld [vmem:[#allocation13 + $0x10] sm:$0xff]  ;;  %s2241_s8 = sshll.u32 %s4061_s17, 4  ;;  %s4062_s2 = smov [#allocation21]   ;;  %s2242_s8 = int_to_ptr.vmem [resolvable:$true] %s2241_s8 }
  0xd6   :  { %v270_v5 = vld [vmem:[#allocation11] sm:$0xff]  ;;  %v271_v6 = vld [vmem:[#allocation11 + $0x8] sm:$0xff]  ;;  %v3281_v7 = vpack.c.bf16 %v287_v4, %v286_v2  ;;  %v321_v10 = vld [vmem:[#allocation13 + $0x18] sm:$0xff]  ;;  %s2251_s0 = sshll.u32 %s4062_s2, 4  ;;  %s3987_s1 = scalar_lea.vmem %s2242_s8, 32  ;;  %s4594_s0 = int_to_ptr.vmem [resolvable:$true] %s2251_s0 }
  0xd7   :  { %v3283_v8 = vpack.c.bf16 %v271_v6, %v270_v5  ;;  %v288_v11 = vld [vmem:[#allocation11 + $0x90] sm:$0xff]  ;;  %3250 = vmatprep.subr.bf16.mxu0 %v3249_v3  ;;  %v3253_v12 = vpack.c.bf16 %v321_v10, %v320_v9  ;;  %v289_v13 = vld [vmem:[#allocation11 + $0x98] sm:$0xff]  ;;  %v322_v17 = vld [vmem:[#allocation13 + $0x20] sm:$0xff]  ;;  %p3988_p5 = scmp.lt.s32.totalorder %s2242_s8, %s2242_s8 }
  0xd8   :  { %v272_v14 = vld [vmem:[#allocation11 + $0x10] sm:$0xff]  ;;  %v273_v15 = vld [vmem:[#allocation11 + $0x18] sm:$0xff]  ;;  %3282 = vmatprep.subr.bf16.mxu1 %v3281_v7  ;;  %3252 = vmatpush3.bf16.msra.mxu0 %v3249_v3  ;;  %v3285_v16 = vpack.c.bf16 %v289_v13, %v288_v11  ;;  %v323_v18 = vld [vmem:[#allocation13 + $0x28] sm:$0xff] }
  0xd9   :  { %v290_v19 = vld [vmem:[#allocation11 + $0xa0] sm:$0xff]  ;;  %3284 = vmatpush3.bf16.msra.mxu1 %v3283_v8  ;;  %3254 = vmatprep.subr.bf16.mxu0 %v3253_v12  ;;  %v3287_v20 = vpack.c.bf16 %v273_v15, %v272_v14  ;;  %v3257_v21 = vpack.c.bf16 %v323_v18, %v322_v17  ;;  %v291_v22 = vld [vmem:[#allocation11 + $0xa8] sm:$0xff]  ;;  %v324_v26 = vld [vmem:[#allocation13 + $0x30] sm:$0xff] }
  0xda   :  { %v274_v23 = vld [vmem:[#allocation11 + $0x20] sm:$0xff]  ;;  %3286 = vmatprep.subr.bf16.mxu1 %v3285_v16  ;;  %v3289_v24 = vpack.c.bf16 %v291_v22, %v290_v19  ;;  %v275_v25 = vld [vmem:[#allocation11 + $0x28] sm:$0xff]  ;;  %v325_v27 = vld [vmem:[#allocation13 + $0x38] sm:$0xff] }
  0xdb   :  { %v292_v28 = vld [vmem:[#allocation11 + $0xb0] sm:$0xff]  ;;  %v293_v29 = vld [vmem:[#allocation11 + $0xb8] sm:$0xff]  ;;  %v3291_v30 = vpack.c.bf16 %v275_v25, %v274_v23  ;;  %v3261_v31 = vpack.c.bf16 %v325_v27, %v324_v26  ;;  %v326_v35 = vld [vmem:[#allocation13 + $0x40] sm:$0xff] }
  0xdc   :  { %3256 = vmatpush3.bf16.msra.mxu0 %v3253_v12  ;;  %v276_v32 = vld [vmem:[#allocation11 + $0x30] sm:$0xff]  ;;  %v3293_v33 = vpack.c.bf16 %v293_v29, %v292_v28  ;;  %v277_v34 = vld [vmem:[#allocation11 + $0x38] sm:$0xff]  ;;  %v327_v36 = vld [vmem:[#allocation13 + $0x48] sm:$0xff] }
  0xdd   :  { %3288 = vmatpush3.bf16.msra.mxu1 %v3287_v20  ;;  %3258 = vmatprep.subr.bf16.mxu0 %v3257_v21  ;;  %v294_v37 = vld [vmem:[#allocation11 + $0xc0] sm:$0xff]  ;;  %v295_v38 = vld [vmem:[#allocation11 + $0xc8] sm:$0xff]  ;;  %v3295_v39 = vpack.c.bf16 %v277_v34, %v276_v32  ;;  %v3265_v40 = vpack.c.bf16 %v327_v36, %v326_v35  ;;  %v328_v44 = vld [vmem:[#allocation13 + $0x50] sm:$0xff] }
  0xde   :  { %3290 = vmatprep.subr.bf16.mxu1 %v3289_v24  ;;  %v278_v41 = vld [vmem:[#allocation11 + $0x40] sm:$0xff]  ;;  %v3297_v42 = vpack.c.bf16 %v295_v38, %v294_v37  ;;  %v279_v43 = vld [vmem:[#allocation11 + $0x48] sm:$0xff]  ;;  %v329_v45 = vld [vmem:[#allocation13 + $0x58] sm:$0xff] }
  0xdf   :  { %v296_v46 = vld [vmem:[#allocation11 + $0xd0] sm:$0xff]  ;;  %v297_v47 = vld [vmem:[#allocation11 + $0xd8] sm:$0xff]  ;;  %v4315_v48 = vld [vmem:[#allocation2] sm:$0xff]  ;;  %v3299_v50 = vpack.c.bf16 %v279_v43, %v278_v41  ;;  %v3269_v51 = vpack.c.bf16 %v329_v45, %v328_v44 }
  0xe0   :  { %3260 = vmatpush3.bf16.msra.mxu0 %v3257_v21  ;;  %v223_v49 = vld [vmem:[#allocation5 + $0x8] sm:$0xff]  ;;  %v280_v52 = vld [vmem:[#allocation11 + $0x50] sm:$0xff]  ;;  %v3301_v53 = vpack.c.bf16 %v297_v47, %v296_v46  ;;  %v281_v54 = vld [vmem:[#allocation11 + $0x58] sm:$0xff]  ;;  %2707 = vmatprep.mubr.f32.mxu0 %v4315_v48 }
  0xe1   :  { %3292 = vmatpush3.bf16.msra.mxu1 %v3291_v30  ;;  %3262 = vmatprep.subr.bf16.mxu0 %v3261_v31  ;;  %v330_v55 = vld [vmem:[#allocation13 + $0x60] sm:$0xff]  ;;  %v331_v56 = vld [vmem:[#allocation13 + $0x68] sm:$0xff]  ;;  %v3303_v59 = vpack.c.bf16 %v281_v54, %v280_v52  ;;  %v332_v0 = vld [vmem:[#allocation13 + $0x70] sm:$0xff] }
  0xe2   :  { %3294 = vmatprep.subr.bf16.mxu1 %v3293_v33  ;;  %v298_v57 = vld [vmem:[#allocation11 + $0xe0] sm:$0xff]  ;;  %v299_v58 = vld [vmem:[#allocation11 + $0xe8] sm:$0xff]  ;;  %543 = vmatprep.mubr.f32.mxu1 %v223_v49  ;;  %v3273_v60 = vpack.c.bf16 %v331_v56, %v330_v55  ;;  %v333_v1 = vld [vmem:[#allocation13 + $0x78] sm:$0xff] }
  0xe3   :  { %v282_v61 = vld [vmem:[#allocation11 + $0x60] sm:$0xff]  ;;  %v3305_v62 = vpack.c.bf16 %v299_v58, %v298_v57  ;;  %v283_v63 = vld [vmem:[#allocation11 + $0x68] sm:$0xff]  ;;  %v300_v2 = vld [vmem:[#allocation11 + $0xf0] sm:$0xff]  ;;  %v3277_v5 = vpack.c.bf16 %v333_v1, %v332_v0 }
  0xe4   :  { %3264 = vmatpush3.bf16.msra.mxu0 %v3261_v31  ;;  %v301_v3 = vld [vmem:[#allocation11 + $0xf8] sm:$0xff]  ;;  %v3307_v4 = vpack.c.bf16 %v283_v63, %v282_v61  ;;  %v284_v6 = vld [vmem:[#allocation11 + $0x70] sm:$0xff]  ;;  %v302_v9 = vld [vmem:[#allocation11 + $0x100] sm:$0xff] }
  0xe5   :  { %3296 = vmatpush3.bf16.msra.mxu1 %v3295_v39  ;;  %3266 = vmatprep.subr.bf16.mxu0 %v3265_v40  ;;  %v3309_v7 = vpack.c.bf16 %v301_v3, %v300_v2  ;;  %v285_v8 = vld [vmem:[#allocation11 + $0x78] sm:$0xff]  ;;  %v303_v10 = vld [vmem:[#allocation11 + $0x108] sm:$0xff]  ;;  %v304_v13 = vld [vmem:[#allocation11 + $0x110] sm:$0xff] }
  0xe6   :  { %3298 = vmatprep.subr.bf16.mxu1 %v3297_v42  ;;  %v3311_v11 = vpack.c.bf16 %v285_v8, %v284_v6  ;;  %v3313_v12 = vpack.c.bf16 %v303_v10, %v302_v9  ;;  %v305_v14 = vld [vmem:[#allocation11 + $0x118] sm:$0xff]  ;;  %v4318_v15 = vld [vmem:[#allocation2 + $0x8] sm:$0xff]  ;;  %v222_v16 = vld [vmem:[#allocation5] sm:$0xff] }
  0xe7   :  { %v4320_v17 = vld [vmem:[#allocation2 + $0x10] sm:$0xff]  ;;  %v226_v18 = vld [vmem:[#allocation5 + $0x20] sm:$0xff]  ;;  %v3317_v19 = vpack.c.bf16 %v305_v14, %v304_v13  ;;  %v307_v21 = vld [vmem:[#allocation11 + $0x128] sm:$0xff] }
  0xe8   :  { %3268 = vmatpush3.bf16.msra.mxu0 %v3265_v40  ;;  %v306_v20 = vld [vmem:[#allocation11 + $0x120] sm:$0xff]  ;;  %v4323_v22 = vld [vmem:[#allocation2 + $0x18] sm:$0xff]  ;;  %v308_v27 = vld [vmem:[#allocation11 + $0x130] sm:$0xff] }
  0xe9   :  { %3300 = vmatpush3.bf16.msra.mxu1 %v3299_v50  ;;  %3270 = vmatprep.subr.bf16.mxu0 %v3269_v51  ;;  %v225_v23 = vld [vmem:[#allocation5 + $0x18] sm:$0xff]  ;;  %v4326_v24 = vld [vmem:[#allocation2 + $0x20] sm:$0xff]  ;;  %v3321_v26 = vpack.c.bf16 %v307_v21, %v306_v20  ;;  %v4329_v29 = vld [vmem:[#allocation2 + $0x28] sm:$0xff] }
  0xea   :  { %3302 = vmatprep.subr.bf16.mxu1 %v3301_v53  ;;  %v229_v25 = vld [vmem:[#allocation5 + $0x38] sm:$0xff]  ;;  %v228_v30 = vld [vmem:[#allocation5 + $0x30] sm:$0xff]  ;;  %v310_v34 = vld [vmem:[#allocation11 + $0x140] sm:$0xff] }
  0xeb   :  { %v309_v28 = vld [vmem:[#allocation11 + $0x138] sm:$0xff]  ;;  %v4332_v31 = vld [vmem:[#allocation2 + $0x30] sm:$0xff]  ;;  %v311_v35 = vld [vmem:[#allocation11 + $0x148] sm:$0xff] }
  0xec   :  { %3272 = vmatpush3.bf16.msra.mxu0 %v3269_v51  ;;  %v232_v32 = vld [vmem:[#allocation5 + $0x50] sm:$0xff]  ;;  %v3325_v33 = vpack.c.bf16 %v309_v28, %v308_v27  ;;  %v4335_v36 = vld [vmem:[#allocation2 + $0x38] sm:$0xff]  ;;  %v231_v37 = vld [vmem:[#allocation5 + $0x48] sm:$0xff]  ;;  %v3329_v40 = vpack.c.bf16 %v311_v35, %v310_v34 }
  0xed   :  { %3304 = vmatpush3.bf16.msra.mxu1 %v3303_v59  ;;  %3274 = vmatprep.subr.bf16.mxu0 %v3273_v60  ;;  %v4338_v38 = vld [vmem:[#allocation2 + $0x40] sm:$0xff]  ;;  %v235_v39 = vld [vmem:[#allocation5 + $0x68] sm:$0xff]  ;;  %v312_v42 = vld [vmem:[#allocation11 + $0x150] sm:$0xff] }
  0xee   :  { %3306 = vmatprep.subr.bf16.mxu1 %v3305_v62  ;;  %v4341_v41 = vld [vmem:[#allocation2 + $0x48] sm:$0xff]  ;;  %v313_v43 = vld [vmem:[#allocation11 + $0x158] sm:$0xff]  ;;  %v969_v44 = vld [vmem:[#allocation14] sm:$0xff] }
  0xef   :  { %v970_v45 = vld [vmem:[#allocation14 + $0x8] sm:$0xff]  ;;  %v971_v46 = vld [vmem:[#allocation14 + $0x10] sm:$0xff]  ;;  %v234_v47 = vld [vmem:[#allocation5 + $0x60] sm:$0xff]  ;;  %v3333_v53 = vpack.c.bf16 %v313_v43, %v312_v42 }
  0xf0   :  { %3276 = vmatpush3.bf16.msra.mxu0 %v3273_v60  ;;  %v3377_v49 = vpack.c.bf16 %v970_v45, %v969_v44  ;;  %v972_v50 = vld [vmem:[#allocation14 + $0x18] sm:$0xff]  ;;  %v4344_v51 = vld [vmem:[#allocation2 + $0x50] sm:$0xff]  ;;  %v238_v52 = vld [vmem:[#allocation5 + $0x80] sm:$0xff] }
  0xf1   :  { %3308 = vmatpush3.bf16.msra.mxu1 %v3307_v4  ;;  %3278 = vmatprep.subr.bf16.mxu0 %v3277_v5  ;;  %v314_v54 = vld [vmem:[#allocation11 + $0x160] sm:$0xff]  ;;  %v315_v55 = vld [vmem:[#allocation11 + $0x168] sm:$0xff]  ;;  %v3381_v56 = vpack.c.bf16 %v972_v50, %v971_v46  ;;  %v4347_v57 = vld [vmem:[#allocation2 + $0x58] sm:$0xff] }
  0xf2   :  { %3310 = vmatprep.subr.bf16.mxu1 %v3309_v7  ;;  %v237_v58 = vld [vmem:[#allocation5 + $0x78] sm:$0xff]  ;;  %v4350_v59 = vld [vmem:[#allocation2 + $0x60] sm:$0xff]  ;;  %v3337_v61 = vpack.c.bf16 %v315_v55, %v314_v54  ;;  %v316_v62 = vld [vmem:[#allocation11 + $0x170] sm:$0xff] }
  0xf3   :  { %v241_v60 = vld [vmem:[#allocation5 + $0x98] sm:$0xff]  ;;  %v4353_v0 = vld [vmem:[#allocation2 + $0x68] sm:$0xff]  ;;  %v240_v1 = vld [vmem:[#allocation5 + $0x90] sm:$0xff] }
  0xf4   :  { %3280 = vmatpush3.bf16.msra.mxu0 %v3277_v5  ;;  %v317_v63 = vld [vmem:[#allocation11 + $0x178] sm:$0xff]  ;;  %v4356_v2 = vld [vmem:[#allocation2 + $0x70] sm:$0xff]  ;;  %v792_v5 = vld [vmem:[#allocation10] sm:$0xff] }
  0xf5   :  { %3312 = vmatpush3.bf16.msra.mxu1 %v3311_v11  ;;  %3314 = vmatprep.subr.bf16.mxu0 %v3313_v12  ;;  %v244_v3 = vld [vmem:[#allocation5 + $0xb0] sm:$0xff]  ;;  %v3341_v4 = vpack.c.bf16 %v317_v63, %v316_v62  ;;  %v793_v6 = vld [vmem:[#allocation10 + $0x8] sm:$0xff]  ;;  %v4359_v7 = vld [vmem:[#allocation2 + $0x78] sm:$0xff] }
  0xf6   :  { %3378 = vmatprep.subr.bf16.mxu1 %v3377_v49  ;;  %v243_v8 = vld [vmem:[#allocation5 + $0xa8] sm:$0xff]  ;;  %v224_v10 = vld [vmem:[#allocation5 + $0x10] sm:$0xff]  ;;  %v4362_v11 = vpack.c.bf16 %v793_v6, %v792_v5  ;;  %v795_v13 = vld [vmem:[#allocation10 + $0x18] sm:$0xff] }
  0xf7   :  { %2708 = vmatmul.mubr.f32.vlgmr.msra.gmra.mrb[0].mxu0 %v4318_v15  ;;  %v247_v9 = vld [vmem:[#allocation5 + $0xc8] sm:$0xff]  ;;  %v796_v21 = vld [vmem:[#allocation10 + $0x20] sm:$0xff]  ;;  %v253_v27 = vld [vmem:[#allocation5 + $0xf8] sm:$0xff] }
  0xf8   :  { %544 = vmatmul.mubr.f32.vlgmr.msra.gmra.mrb[0].mxu1 %v222_v16  ;;  %3316 = vmatpush3.bf16.msra.mxu0 %v3313_v12  ;;  %v794_v12 = vld [vmem:[#allocation10 + $0x10] sm:$0xff]  ;;  %v227_v14 = vld [vmem:[#allocation5 + $0x28] sm:$0xff]  ;;  %v246_v16 = vld [vmem:[#allocation5 + $0xc0] sm:$0xff] }
  0xf9   :  { %2710 = vmatprep.mubr.f32.mxu0 %v4320_v17  ;;  %548 = vmatprep.mubr.f32.mxu1 %v226_v18  ;;  %v250_v18 = vld [vmem:[#allocation5 + $0xe0] sm:$0xff]  ;;  %v4366_v20 = vpack.c.bf16 %v795_v13, %v794_v12  ;;  %v236_v28 = vld [vmem:[#allocation5 + $0x70] sm:$0xff]  ;;  %v239_v34 = vld [vmem:[#allocation5 + $0x88] sm:$0xff] }
  0xfa   :  { %3318 = vmatprep.subr.bf16.mxu0 %v3317_v19  ;;  %3380 = vmatpush3.bf16.msra.mxu1 %v3377_v49  ;;  %v252_v35 = vld [vmem:[#allocation5 + $0xf0] sm:$0xff]  ;;  %v800_v42 = vld [vmem:[#allocation10 + $0x40] sm:$0xff]  ;;  %v801_v43 = vld [vmem:[#allocation10 + $0x48] sm:$0xff] }
  0xfb   :  { %2711 = vmatmul.mubr.f32.gmra.mrb[2].mxu0 %v4323_v22  ;;  %3382 = vmatprep.subr.bf16.mxu1 %v3381_v56  ;;  %v245_v44 = vld [vmem:[#allocation5 + $0xb8] sm:$0xff]  ;;  %v255_v45 = vld [vmem:[#allocation5 + $0x108] sm:$0xff]  ;;  %v4378_v49 = vpack.c.bf16 %v801_v43, %v800_v42  ;;  %v802_v50 = vld [vmem:[#allocation10 + $0x50] sm:$0xff] }
  0xfc   :  { %549 = vmatmul.mubr.f32.gmra.mrb[2].mxu1 %v225_v23  ;;  %3320 = vmatpush3.bf16.msra.mxu0 %v3317_v19  ;;  %v230_v19 = vld [vmem:[#allocation5 + $0x40] sm:$0xff]  ;;  %v797_v23 = vld [vmem:[#allocation10 + $0x28] sm:$0xff]  ;;  %v257_v62 = vld [vmem:[#allocation5 + $0x118] sm:$0xff] }
  0xfd   :  { %2713 = vmatprep.mubr.f32.mxu0 %v4326_v24  ;;  %553 = vmatprep.mubr.f32.mxu1 %v229_v25  ;;  %v233_v25 = vld [vmem:[#allocation5 + $0x58] sm:$0xff]  ;;  %v259_v46 = vld [vmem:[#allocation5 + $0x128] sm:$0xff]  ;;  %v258_v54 = vld [vmem:[#allocation5 + $0x120] sm:$0xff] }
  0xfe   :  { %3322 = vmatprep.subr.bf16.mxu0 %v3321_v26  ;;  %3384 = vmatpush3.bf16.msra.mxu1 %v3381_v56  ;;  %v262_v55 = vld [vmem:[#allocation5 + $0x140] sm:$0xff]  ;;  %v261_v63 = vld [vmem:[#allocation5 + $0x138] sm:$0xff]  ;;  %v806_v5 = vld [vmem:[#allocation10 + $0x70] sm:$0xff] }
  0xff   :  { %2714 = vmatmul.mubr.f32.gmra.mrb[4].mxu0 %v4329_v29  ;;  %v254_v56 = vld [vmem:[#allocation5 + $0x100] sm:$0xff]  ;;  %v807_v6 = vld [vmem:[#allocation10 + $0x78] sm:$0xff] }
 0x100   :  { %554 = vmatmul.mubr.f32.gmra.mrb[4].mxu1 %v228_v30  ;;  %3324 = vmatpush3.bf16.msra.mxu0 %v3321_v26  ;;  %v249_v26 = vld [vmem:[#allocation5 + $0xd8] sm:$0xff]  ;;  %v4370_v30 = vpack.c.bf16 %v797_v23, %v796_v21  ;;  %v266_v12 = vld [vmem:[#allocation5 + $0x160] sm:$0xff]  ;;  %v4390_v13 = vpack.c.bf16 %v807_v6, %v806_v5 }
 0x101   :  { %2716 = vmatprep.mubr.f32.mxu0 %v4332_v31  ;;  %558 = vmatprep.mubr.f32.mxu1 %v232_v32  ;;  %v798_v32 = vld [vmem:[#allocation10 + $0x30] sm:$0xff] }
 0x102   :  { %3326 = vmatprep.subr.bf16.mxu0 %v3325_v33 }
 0x103   :  { %2717 = vmatmul.mubr.f32.gmra.mrb[6].mxu0 %v4335_v36 }
 0x104   :  { %559 = vmatmul.mubr.f32.gmra.mrb[6].mxu1 %v231_v37  ;;  %3328 = vmatpush3.bf16.msra.mxu0 %v3325_v33  ;;  %v799_v33 = vld [vmem:[#allocation10 + $0x38] sm:$0xff]  ;;  %v256_v37 = vld [vmem:[#allocation5 + $0x110] sm:$0xff] }
 0x105   :  { %2719 = vmatprep.mubr.f32.mxu0 %v4338_v38  ;;  %563 = vmatprep.mubr.f32.mxu1 %v235_v39  ;;  %v242_v39 = vld [vmem:[#allocation5 + $0xa0] sm:$0xff] }
 0x106   :  { %3330 = vmatprep.subr.bf16.mxu0 %v3329_v40 }
 0x107   :  { %2720 = vmatmul.mubr.f32.gmra.mrb[8].mxu0 %v4341_v41 }
 0x108   :  { %564 = vmatmul.mubr.f32.gmra.mrb[8].mxu1 %v234_v47  ;;  %3332 = vmatpush3.bf16.msra.mxu0 %v3329_v40  ;;  %v4374_v40 = vpack.c.bf16 %v799_v33, %v798_v32  ;;  %v248_v47 = vld [vmem:[#allocation5 + $0xd0] sm:$0xff] }
 0x109   :  { %2722 = vmatprep.mubr.f32.mxu0 %v4344_v51  ;;  %568 = vmatprep.mubr.f32.mxu1 %v238_v52  ;;  %v803_v52 = vld [vmem:[#allocation10 + $0x58] sm:$0xff] }
 0x10a   :  { %3334 = vmatprep.subr.bf16.mxu0 %v3333_v53 }
 0x10b   :  { %2723 = vmatmul.mubr.f32.gmra.mrb[10].mxu0 %v4347_v57 }
 0x10c   :  { %569 = vmatmul.mubr.f32.gmra.mrb[10].mxu1 %v237_v58  ;;  %3336 = vmatpush3.bf16.msra.mxu0 %v3333_v53  ;;  %v251_v53 = vld [vmem:[#allocation5 + $0xe8] sm:$0xff]  ;;  %v4382_v58 = vpack.c.bf16 %v803_v52, %v802_v50 }
 0x10d   :  { %2725 = vmatprep.mubr.f32.mxu0 %v4350_v59  ;;  %573 = vmatprep.mubr.f32.mxu1 %v241_v60  ;;  %v804_v60 = vld [vmem:[#allocation10 + $0x60] sm:$0xff] }
 0x10e   :  { %3338 = vmatprep.subr.bf16.mxu0 %v3337_v61 }
 0x10f   :  { %2726 = vmatmul.mubr.f32.gmra.mrb[12].mxu0 %v4353_v0 }
 0x110   :  { %574 = vmatmul.mubr.f32.gmra.mrb[12].mxu1 %v240_v1  ;;  %3340 = vmatpush3.bf16.msra.mxu0 %v3337_v61  ;;  %v805_v61 = vld [vmem:[#allocation10 + $0x68] sm:$0xff]  ;;  %v265_v1 = vld [vmem:[#allocation5 + $0x158] sm:$0xff] }
 0x111   :  { %2728 = vmatprep.mubr.f32.mxu0 %v4356_v2  ;;  %578 = vmatprep.mubr.f32.mxu1 %v244_v3  ;;  %v260_v3 = vld [vmem:[#allocation5 + $0x130] sm:$0xff] }
 0x112   :  { %3342 = vmatprep.subr.bf16.mxu0 %v3341_v4 }
 0x113   :  { %2729 = vmatmul.mubr.f32.gmra.mrb[14].mxu0 %v4359_v7 }
 0x114   :  { %579 = vmatmul.mubr.f32.gmra.mrb[14].mxu1 %v243_v8  ;;  %3344 = vmatpush3.bf16.msra.mxu0 %v3341_v4  ;;  %v4386_v4 = vpack.c.bf16 %v805_v61, %v804_v60  ;;  %v263_v8 = vld [vmem:[#allocation5 + $0x148] sm:$0xff] }
 0x115   :  { %583 = vmatprep.mubr.f32.mxu1 %v247_v9  ;;  %2763 = vmatprep.mubr.f32.mxu0 %v224_v10  ;;  %v264_v9 = vld [vmem:[#allocation5 + $0x150] sm:$0xff] }
 0x116   :  { %3346 = vmatprep.subr.bf16.mxu0 %v4362_v11  ;;  %v268_v10 = vld [vmem:[#allocation5 + $0x170] sm:$0xff] }
 0x117   :  { %2764 = vmatmul.mubr.f32.vlgmr.msra.gmra.mrb[0].mxu0 %v227_v14  ;;  %v269_v14 = vld [vmem:[#allocation5 + $0x178] sm:$0xff] }
 0x118   :  { %584 = vmatmul.mubr.f32.gmra.mrb[16].mxu1 %v246_v16  ;;  %3348 = vmatpush3.bf16.msra.mxu0 %v4362_v11  ;;  %v267_v16 = vld [vmem:[#allocation5 + $0x168] sm:$0xff] }
 0x119   :  { %588 = vmatprep.mubr.f32.mxu1 %v250_v18  ;;  %2766 = vmatprep.mubr.f32.mxu0 %v230_v19  ;;  %v984_v18 = vld [vmem:[#allocation14 + $0x78] sm:$0xff] }
 0x11a   :  { %3350 = vmatprep.subr.bf16.mxu0 %v4366_v20 }
 0x11b   :  { %2767 = vmatmul.mubr.f32.gmra.mrb[2].mxu0 %v233_v25 }
 0x11c   :  { %589 = vmatmul.mubr.f32.gmra.mrb[18].mxu1 %v249_v26  ;;  %3352 = vmatpush3.bf16.msra.mxu0 %v4366_v20 }
 0x11d   :  { %593 = vmatprep.mubr.f32.mxu1 %v253_v27  ;;  %2769 = vmatprep.mubr.f32.mxu0 %v236_v28 }
 0x11e   :  { %3354 = vmatprep.subr.bf16.mxu0 %v4370_v30 }
 0x11f   :  { %2770 = vmatmul.mubr.f32.gmra.mrb[4].mxu0 %v239_v34 }
 0x120   :  { %594 = vmatmul.mubr.f32.gmra.mrb[20].mxu1 %v252_v35  ;;  %3356 = vmatpush3.bf16.msra.mxu0 %v4370_v30 }
 0x121   :  { %598 = vmatprep.mubr.f32.mxu1 %v256_v37  ;;  %2772 = vmatprep.mubr.f32.mxu0 %v242_v39 }
 0x122   :  { %3358 = vmatprep.subr.bf16.mxu0 %v4374_v40 }
 0x123   :  { %2773 = vmatmul.mubr.f32.gmra.mrb[6].mxu0 %v245_v44 }
 0x124   :  { %599 = vmatmul.mubr.f32.gmra.mrb[22].mxu1 %v255_v45  ;;  %3360 = vmatpush3.bf16.msra.mxu0 %v4374_v40 }
 0x125   :  { %603 = vmatprep.mubr.f32.mxu1 %v259_v46  ;;  %2775 = vmatprep.mubr.f32.mxu0 %v248_v47 }
 0x126   :  { %3362 = vmatprep.subr.bf16.mxu0 %v4378_v49 }
 0x127   :  { %2776 = vmatmul.mubr.f32.gmra.mrb[8].mxu0 %v251_v53 }
 0x128   :  { %604 = vmatmul.mubr.f32.gmra.mrb[24].mxu1 %v258_v54  ;;  %3364 = vmatpush3.bf16.msra.mxu0 %v4378_v49 }
 0x129   :  { %608 = vmatprep.mubr.f32.mxu1 %v262_v55  ;;  %2778 = vmatprep.mubr.f32.mxu0 %v254_v56 }
 0x12a   :  { %3366 = vmatprep.subr.bf16.mxu0 %v4382_v58 }
 0x12b   :  { %2779 = vmatmul.mubr.f32.gmra.mrb[10].mxu0 %v257_v62 }
 0x12c   :  { %609 = vmatmul.mubr.f32.gmra.mrb[26].mxu1 %v261_v63  ;;  %3368 = vmatpush3.bf16.msra.mxu0 %v4382_v58 }
 0x12d   :  { %613 = vmatprep.mubr.f32.mxu1 %v265_v1  ;;  %2781 = vmatprep.mubr.f32.mxu0 %v260_v3 }
 0x12e   :  { %3370 = vmatprep.subr.bf16.mxu0 %v4386_v4 }
 0x12f   :  { %2782 = vmatmul.mubr.f32.gmra.mrb[12].mxu0 %v263_v8 }
 0x130   :  { %614 = vmatmul.mubr.f32.gmra.mrb[28].mxu1 %v264_v9  ;;  %3372 = vmatpush3.bf16.msra.mxu0 %v4386_v4 }
 0x131   :  { %618 = vmatprep.mubr.f32.mxu1 %v268_v10  ;;  %2784 = vmatprep.mubr.f32.mxu0 %v266_v12 }
 0x132   :  { %3374 = vmatprep.subr.bf16.mxu0 %v4390_v13 }
 0x133   :  { %2785 = vmatmul.mubr.f32.gmra.mrb[14].mxu0 %v269_v14 }
 0x134   :  { %619 = vmatmul.mubr.f32.gmra.mrb[30].mxu1 %v267_v16  ;;  %3376 = vmatpush3.bf16.msra.mxu0 %v4390_v13 }
 0x135   :  { %2819 = vmatprep.mubr.f32.mxu0 %v4315_v48  ;;  %v973_v48 = vld [vmem:[#allocation14 + $0x20] sm:$0xff] }
 0x137   :  { %2820 = vmatmul.mubr.f32.vlgmr.msra.gmra.mrb[16].mxu0 %v4318_v15  ;;  %v974_v15 = vld [vmem:[#allocation14 + $0x28] sm:$0xff] }
 0x138   :  { %2822 = vmatprep.mubr.f32.mxu0 %v4320_v17  ;;  %v3385_v17 = vpack.c.bf16 %v974_v15, %v973_v48 }
 0x13a   :  { %3386 = vmatprep.subr.bf16.mxu1 %v3385_v17 }
 0x13b   :  { %2823 = vmatmul.mubr.f32.gmra.mrb[18].mxu0 %v4323_v22  ;;  %3388 = vmatpush3.bf16.msra.mxu1 %v3385_v17  ;;  %v975_v22 = vld [vmem:[#allocation14 + $0x30] sm:$0xff] }
 0x13c   :  { %2825 = vmatprep.mubr.f32.mxu0 %v4326_v24  ;;  %v976_v24 = vld [vmem:[#allocation14 + $0x38] sm:$0xff] }
 0x13f   :  { %2826 = vmatmul.mubr.f32.gmra.mrb[20].mxu0 %v4329_v29  ;;  %v3389_v29 = vpack.c.bf16 %v976_v24, %v975_v22 }
 0x140   :  { %2828 = vmatprep.mubr.f32.mxu0 %v4332_v31  ;;  %v977_v31 = vld [vmem:[#allocation14 + $0x40] sm:$0xff] }
 0x141   :  { %3390 = vmatprep.subr.bf16.mxu1 %v3389_v29 }
 0x142   :  { %3392 = vmatpush3.bf16.msra.mxu1 %v3389_v29 }
 0x143   :  { %2829 = vmatmul.mubr.f32.gmra.mrb[22].mxu0 %v4335_v36  ;;  %v978_v36 = vld [vmem:[#allocation14 + $0x48] sm:$0xff] }
 0x144   :  { %2831 = vmatprep.mubr.f32.mxu0 %v4338_v38  ;;  %v3393_v38 = vpack.c.bf16 %v978_v36, %v977_v31 }
 0x146   :  { %3394 = vmatprep.subr.bf16.mxu1 %v3393_v38 }
 0x147   :  { %2832 = vmatmul.mubr.f32.gmra.mrb[24].mxu0 %v4341_v41  ;;  %3396 = vmatpush3.bf16.msra.mxu1 %v3393_v38  ;;  %v979_v41 = vld [vmem:[#allocation14 + $0x50] sm:$0xff] }
 0x148   :  { %2834 = vmatprep.mubr.f32.mxu0 %v4344_v51  ;;  %v980_v51 = vld [vmem:[#allocation14 + $0x58] sm:$0xff] }
 0x14b   :  { %2835 = vmatmul.mubr.f32.gmra.mrb[26].mxu0 %v4347_v57  ;;  %v3397_v57 = vpack.c.bf16 %v980_v51, %v979_v41 }
 0x14c   :  { %2837 = vmatprep.mubr.f32.mxu0 %v4350_v59  ;;  %v981_v59 = vld [vmem:[#allocation14 + $0x60] sm:$0xff] }
 0x14d   :  { %3398 = vmatprep.subr.bf16.mxu1 %v3397_v57 }
 0x14e   :  { %3400 = vmatpush3.bf16.msra.mxu1 %v3397_v57 }
 0x14f   :  { %2838 = vmatmul.mubr.f32.gmra.mrb[28].mxu0 %v4353_v0  ;;  %v982_v0 = vld [vmem:[#allocation14 + $0x68] sm:$0xff] }
 0x150   :  { %2840 = vmatprep.mubr.f32.mxu0 %v4356_v2  ;;  %v3401_v2 = vpack.c.bf16 %v982_v0, %v981_v59 }
 0x152   :  { %3402 = vmatprep.subr.bf16.mxu1 %v3401_v2 }
 0x153   :  { %2841 = vmatmul.mubr.f32.gmra.mrb[30].mxu0 %v4359_v7  ;;  %3404 = vmatpush3.bf16.msra.mxu1 %v3401_v2  ;;  %v983_v7 = vld [vmem:[#allocation14 + $0x70] sm:$0xff] }
 0x154   :  { %v3405_v19 = vpack.c.bf16 %v984_v18, %v983_v7 }
 0x156   :  { %3406 = vmatprep.subr.bf16.mxu1 %v3405_v19 }
 0x157   :  { %3408 = vmatpush3.bf16.msra.mxu1 %v3405_v19 }
 0x158   :  { %3442 = vmatprep.subr.bf16.mxu1 %v4362_v11 }
 0x1cb   :  { %v2337_v21 = vpop.f32.mrb[0].mxu1 }
 0x1cc   :  { %v2338_v23 = vpop.f32.mrb[1].mxu1 }
 0x1cd   :  { %v2339_v25 = vadd.f32 %v2338_v23, %v2337_v21 }
 0x1cf   :  { %v2340_v26 = vpop.f32.mrb[2].mxu1 }
 0x1d0   :  { %v2341_v27 = vpop.f32.mrb[3].mxu1 }
 0x1d1   :  { %v2342_v28 = vadd.f32 %v2341_v27, %v2340_v26 }
 0x1d3   :  { %v2343_v32 = vpop.f32.mrb[4].mxu1 }
 0x1d4   :  { %v2344_v33 = vpop.f32.mrb[5].mxu1 }
 0x1d5   :  { %v2345_v34 = vadd.f32 %v2344_v33, %v2343_v32 }
 0x1d7   :  { %v2346_v35 = vpop.f32.mrb[6].mxu1 }
 0x1d8   :  { %v2347_v37 = vpop.f32.mrb[7].mxu1 }
 0x1d9   :  { %v2348_v39 = vadd.f32 %v2347_v37, %v2346_v35 }
 0x1db   :  { %v2349_v42 = vpop.f32.mrb[8].mxu1 }
 0x1dc   :  { %v2350_v43 = vpop.f32.mrb[9].mxu1 }
 0x1dd   :  { %v2351_v44 = vadd.f32 %v2350_v43, %v2349_v42 }
 0x1df   :  { %v2352_v45 = vpop.f32.mrb[10].mxu1 }
 0x1e0   :  { %v2353_v46 = vpop.f32.mrb[11].mxu1 }
 0x1e1   :  { %v2354_v47 = vadd.f32 %v2353_v46, %v2352_v45 }
 0x1e3   :  { %v2355_v50 = vpop.f32.mrb[12].mxu1 }
 0x1e4   :  { %v2356_v52 = vpop.f32.mrb[13].mxu1 }
 0x1e5   :  { %v2357_v53 = vadd.f32 %v2356_v52, %v2355_v50 }
 0x1e7   :  { %v2358_v54 = vpop.f32.mrb[14].mxu1 }
 0x1e8   :  { %v2359_v55 = vpop.f32.mrb[15].mxu1 }
 0x1e9   :  { %v2360_v56 = vadd.f32 %v2359_v55, %v2358_v54 }
 0x1ea   :  { %v2765_v60 = vpop.f32.mrb[0].mxu0 }
 0x1eb   :  { %v3617_v61 = vadd.f32 %v2765_v60, %v2342_v28  ;;  %v690_v62 = vpop.f32.mrb[1].mxu0  ;;  %v2361_v63 = vpop.f32.mrb[16].mxu1 }
 0x1ec   :  { %v3618_v1 = vadd.f32 %v2339_v25, %v690_v62  ;;  %v2362_v3 = vpop.f32.mrb[17].mxu1 }
 0x1ed   :  { %v2363_v5 = vadd.f32 %v2362_v3, %v2361_v63 }
 0x1ee   :  { %v2768_v6 = vpop.f32.mrb[2].mxu0 }
 0x1ef   :  { %v3619_v8 = vadd.f32 %v2768_v6, %v2348_v39  ;;  %v700_v9 = vpop.f32.mrb[3].mxu0  ;;  %v2364_v10 = vpop.f32.mrb[18].mxu1 }
 0x1f0   :  { %v3620_v12 = vadd.f32 %v2345_v34, %v700_v9  ;;  %v2365_v14 = vpop.f32.mrb[19].mxu1 }
 0x1f1   :  { %v2366_v16 = vadd.f32 %v2365_v14, %v2364_v10 }
 0x1f2   :  { %v2771_v48 = vpop.f32.mrb[4].mxu0 }
 0x1f3   :  { %v3621_v15 = vadd.f32 %v2771_v48, %v2354_v47  ;;  %v710_v17 = vpop.f32.mrb[5].mxu0  ;;  %v2367_v22 = vpop.f32.mrb[20].mxu1  ;;  %v4423_v47 = vld [vmem:[%s4633_s7] ss:$0 sm:$0xff] }
 0x1f4   :  { %v3622_v24 = vadd.f32 %v2351_v44, %v710_v17  ;;  %v2368_v29 = vpop.f32.mrb[21].mxu1  ;;  %v4431_v62 = vadd.f32 %v3618_v1, %v4423_v47  ;;  %v4438_v10 = vadd.f32 %v3619_v8, %v4423_v47 }
 0x1f5   :  { %v2369_v31 = vadd.f32 %v2368_v29, %v2367_v22  ;;  %v4446_v17 = vadd.f32 %v3621_v15, %v4423_v47 }
 0x1f6   :  { %v2774_v36 = vpop.f32.mrb[6].mxu0  ;;  %v4449_v29 = vadd.f32 %v3622_v24, %v4423_v47 }
 0x1f7   :  { %v3623_v38 = vadd.f32 %v2774_v36, %v2360_v56  ;;  %v720_v41 = vpop.f32.mrb[7].mxu0  ;;  %v2370_v51 = vpop.f32.mrb[22].mxu1  ;;  %v4428_v56 = vadd.f32 %v3617_v61, %v4423_v47  ;;  %v4441_v61 = vadd.f32 %v3620_v12, %v4423_v47 }
 0x1f8   :  { %v3624_v57 = vadd.f32 %v2357_v53, %v720_v41  ;;  %v2371_v59 = vpop.f32.mrb[23].mxu1 }
 0x1f9   :  { %v2372_v0 = vadd.f32 %v2371_v59, %v2370_v51  ;;  %v4454_v36 = vadd.f32 %v3623_v38, %v4423_v47 }
 0x1fa   :  { %v2777_v2 = vpop.f32.mrb[8].mxu0  ;;  %v4457_v51 = vadd.f32 %v3624_v57, %v4423_v47 }
 0x1fb   :  { %v3625_v7 = vadd.f32 %v2777_v2, %v2366_v16  ;;  %v730_v18 = vpop.f32.mrb[9].mxu0  ;;  %v2373_v19 = vpop.f32.mrb[24].mxu1 }
 0x1fc   :  { %v3626_v21 = vadd.f32 %v2363_v5, %v730_v18  ;;  %v2374_v23 = vpop.f32.mrb[25].mxu1 }
 0x1fd   :  { %v2375_v25 = vadd.f32 %v2374_v23, %v2373_v19  ;;  %v4462_v18 = vadd.f32 %v3625_v7, %v4423_v47 }
 0x1fe   :  { %v2780_v26 = vpop.f32.mrb[10].mxu0  ;;  %v4465_v19 = vadd.f32 %v3626_v21, %v4423_v47 }
 0x1ff   :  { %v4412_v27 = vadd.f32 %v2780_v26, %v2372_v0  ;;  %v2376_v28 = vpop.f32.mrb[26].mxu1  ;;  %v740_v32 = vpop.f32.mrb[11].mxu0 }
 0x200   :  { %v4414_v33 = vadd.f32 %v2369_v31, %v740_v32  ;;  %v2377_v34 = vpop.f32.mrb[27].mxu1 }
 0x201   :  { %v2378_v35 = vadd.f32 %v2377_v34, %v2376_v28  ;;  %v4473_v7 = vadd.f32 %v4412_v27, %v4423_v47 }
 0x202   :  { %v2783_v37 = vpop.f32.mrb[12].mxu0  ;;  %v4477_v32 = vadd.f32 %v4414_v33, %v4423_v47 }
 0x203   :  { %v4416_v39 = vadd.f32 %v2783_v37, %v2378_v35  ;;  %v750_v42 = vpop.f32.mrb[13].mxu0  ;;  %v2379_v43 = vpop.f32.mrb[28].mxu1 }
 0x204   :  { %v4418_v44 = vadd.f32 %v2375_v25, %v750_v42  ;;  %v2380_v45 = vpop.f32.mrb[29].mxu1 }
 0x205   :  { %v2381_v46 = vadd.f32 %v2380_v45, %v2379_v43  ;;  %v4485_v43 = vadd.f32 %v4416_v39, %v4423_v47 }
 0x206   :  { %v2786_v50 = vpop.f32.mrb[14].mxu0  ;;  %v4489_v45 = vadd.f32 %v4418_v44, %v4423_v47 }
 0x207   :  { %v2382_v52 = vpop.f32.mrb[30].mxu1  ;;  %v760_v53 = vpop.f32.mrb[15].mxu0 }
 0x208   :  { %v2383_v54 = vpop.f32.mrb[31].mxu1  ;;  %v4425_v55 = vadd.f32 %v2381_v46, %v760_v53 }
 0x209   :  { %v2384_v60 = vadd.f32 %v2383_v54, %v2382_v52 }
 0x20a   :  { %v2821_v63 = vpop.f32.mrb[16].mxu0 }
 0x20b   :  { %v4433_v3 = vadd.f32 %v2786_v50, %v2384_v60  ;;  %v880_v5 = vadd.f32 %v2821_v63, %v4428_v56  ;;  %v874_v6 = vpop.f32.mrb[17].mxu0  ;;  %v4501_v60 = vadd.f32 %v4425_v55, %v4423_v47 }
 0x20c   :  { %v875_v9 = vadd.f32 %v874_v6, %v4431_v62 }
 0x20d   :  { %v4497_v54 = vadd.f32 %v4433_v3, %v4423_v47 }
 0x20e   :  { %3669 = vtanh.f32 %v875_v9  ;;  %v2824_v14 = vpop.f32.mrb[18].mxu0 }
 0x20f   :  { %3671 = vtanh.f32 %v880_v5  ;;  %v890_v1 = vadd.f32 %v2824_v14, %v4438_v10  ;;  %v884_v16 = vpop.f32.mrb[19].mxu0 }
 0x210   :  { %v885_v48 = vadd.f32 %v884_v16, %v4441_v61 }
 0x212   :  { %3673 = vtanh.f32 %v885_v48  ;;  %v2827_v22 = vpop.f32.mrb[20].mxu0 }
 0x213   :  { %3675 = vtanh.f32 %v890_v1  ;;  %v900_v8 = vadd.f32 %v2827_v22, %v4446_v17  ;;  %v894_v31 = vpop.f32.mrb[21].mxu0  ;;  %v1130_v22 = vld [vmem:[#allocation7] sm:$0xff] }
 0x214   :  { %v895_v12 = vadd.f32 %v894_v31, %v4449_v29  ;;  %2931 = vmatprep.mubr.f32.mxu0 %v1130_v22  ;;  %v1475_v22 = vld [vmem:[#allocation16] sm:$0xff] }
 0x216   :  { %3677 = vtanh.f32 %v895_v12  ;;  %v2830_v41 = vpop.f32.mrb[22].mxu0 }
 0x217   :  { %3679 = vtanh.f32 %v900_v8  ;;  %v910_v15 = vadd.f32 %v2830_v41, %v4454_v36  ;;  %v904_v59 = vpop.f32.mrb[23].mxu0 }
 0x218   :  { %v3670_v24 = vpop.eup %3669  ;;  %v905_v0 = vadd.f32 %v904_v59, %v4457_v51 }
 0x219   :  { %v3672_v2 = vpop.eup %3671  ;;  %2875 = vmatprep.mubr.f32.mxu1 %v3670_v24 }
 0x21a   :  { %3681 = vtanh.f32 %v905_v0  ;;  %v2833_v38 = vpop.f32.mrb[24].mxu0  ;;  %2876 = vmatmul.mubr.f32.vlgmr.msra.gmra.mrb[32].mxu1 %v3672_v2 }
 0x21b   :  { %3683 = vtanh.f32 %v910_v15  ;;  %v920_v57 = vadd.f32 %v2833_v38, %v4462_v18  ;;  %v914_v23 = vpop.f32.mrb[25].mxu0  ;;  %3444 = vmatpush3.bf16.msra.mxu1 %v4362_v11 }
 0x21c   :  { %v3674_v25 = vpop.eup %3673  ;;  %v915_v26 = vadd.f32 %v914_v23, %v4465_v19  ;;  %3446 = vmatprep.subr.bf16.mxu1 %v4366_v20 }
 0x21d   :  { %v3676_v28 = vpop.eup %3675  ;;  %2878 = vmatprep.mubr.f32.mxu1 %v3674_v25 }
 0x21e   :  { %3685 = vtanh.f32 %v915_v26  ;;  %v2836_v21 = vpop.f32.mrb[26].mxu0  ;;  %2879 = vmatmul.mubr.f32.gmra.mrb[34].mxu1 %v3676_v28 }
 0x21f   :  { %3687 = vtanh.f32 %v920_v57  ;;  %v930_v34 = vadd.f32 %v2836_v21, %v4473_v7  ;;  %v924_v35 = vpop.f32.mrb[27].mxu0  ;;  %3448 = vmatpush3.bf16.msra.mxu1 %v4366_v20 }
 0x220   :  { %v3678_v37 = vpop.eup %3677  ;;  %v925_v42 = vadd.f32 %v924_v35, %v4477_v32  ;;  %3450 = vmatprep.subr.bf16.mxu1 %v4370_v30 }
 0x221   :  { %v3680_v27 = vpop.eup %3679  ;;  %2881 = vmatprep.mubr.f32.mxu1 %v3678_v37 }
 0x222   :  { %3689 = vtanh.f32 %v925_v42  ;;  %v2839_v33 = vpop.f32.mrb[28].mxu0  ;;  %2882 = vmatmul.mubr.f32.gmra.mrb[36].mxu1 %v3680_v27 }
 0x223   :  { %3691 = vtanh.f32 %v930_v34  ;;  %v940_v46 = vadd.f32 %v2839_v33, %v4485_v43  ;;  %v934_v50 = vpop.f32.mrb[29].mxu0  ;;  %3452 = vmatpush3.bf16.msra.mxu1 %v4370_v30 }
 0x224   :  { %v3682_v52 = vpop.eup %3681  ;;  %v935_v53 = vadd.f32 %v934_v50, %v4489_v45  ;;  %3454 = vmatprep.subr.bf16.mxu1 %v4374_v40 }
 0x225   :  { %v3684_v39 = vpop.eup %3683  ;;  %2884 = vmatprep.mubr.f32.mxu1 %v3682_v52  ;;  %v1131_v52 = vld [vmem:[#allocation7 + $0x8] sm:$0xff] }
 0x226   :  { %3693 = vtanh.f32 %v935_v53  ;;  %v2842_v44 = vpop.f32.mrb[30].mxu0  ;;  %2885 = vmatmul.mubr.f32.gmra.mrb[38].mxu1 %v3684_v39  ;;  %v1132_v53 = vld [vmem:[#allocation7 + $0x10] sm:$0xff]  ;;  %v1133_v39 = vld [vmem:[#allocation7 + $0x18] sm:$0xff] }
 0x227   :  { %3695 = vtanh.f32 %v940_v46  ;;  %v950_v63 = vadd.f32 %v2842_v44, %v4497_v54  ;;  %v944_v5 = vpop.f32.mrb[31].mxu0  ;;  %3456 = vmatpush3.bf16.msra.mxu1 %v4374_v40  ;;  %v1134_v44 = vld [vmem:[#allocation7 + $0x20] sm:$0xff] }
 0x228   :  { %v3686_v6 = vpop.eup %3685  ;;  %v945_v9 = vadd.f32 %v944_v5, %v4501_v60  ;;  %3458 = vmatprep.subr.bf16.mxu1 %v4378_v49  ;;  %v1136_v5 = vld [vmem:[#allocation7 + $0x30] sm:$0xff] }
 0x229   :  { %v3688_v3 = vpop.eup %3687  ;;  %2887 = vmatprep.mubr.f32.mxu1 %v3686_v6  ;;  %v1137_v6 = vld [vmem:[#allocation7 + $0x38] sm:$0xff] }
 0x22a   :  { %3697 = vtanh.f32 %v945_v9  ;;  %2888 = vmatmul.mubr.f32.gmra.mrb[40].mxu1 %v3688_v3  ;;  %v1138_v9 = vld [vmem:[#allocation7 + $0x40] sm:$0xff]  ;;  %v1139_v3 = vld [vmem:[#allocation7 + $0x48] sm:$0xff] }
 0x22b   :  { %3699 = vtanh.f32 %v950_v63  ;;  %3460 = vmatpush3.bf16.msra.mxu1 %v4378_v49  ;;  %v1135_v63 = vld [vmem:[#allocation7 + $0x28] sm:$0xff] }
 0x22c   :  { %v3690_v47 = vpop.eup %3689  ;;  %3462 = vmatprep.subr.bf16.mxu1 %v4382_v58 }
 0x22d   :  { %v3692_v55 = vpop.eup %3691  ;;  %2890 = vmatprep.mubr.f32.mxu1 %v3690_v47  ;;  %v1140_v47 = vld [vmem:[#allocation7 + $0x50] sm:$0xff] }
 0x22e   :  { %2891 = vmatmul.mubr.f32.gmra.mrb[42].mxu1 %v3692_v55  ;;  %v1141_v55 = vld [vmem:[#allocation7 + $0x58] sm:$0xff] }
 0x22f   :  { %3464 = vmatpush3.bf16.msra.mxu1 %v4382_v58 }
 0x230   :  { %v3694_v14 = vpop.eup %3693  ;;  %3466 = vmatprep.subr.bf16.mxu1 %v4386_v4 }
 0x231   :  { %v3696_v1 = vpop.eup %3695  ;;  %2893 = vmatprep.mubr.f32.mxu1 %v3694_v14  ;;  %v1142_v14 = vld [vmem:[#allocation7 + $0x60] sm:$0xff] }
 0x232   :  { %2894 = vmatmul.mubr.f32.gmra.mrb[44].mxu1 %v3696_v1  ;;  %v1143_v1 = vld [vmem:[#allocation7 + $0x68] sm:$0xff] }
 0x233   :  { %3468 = vmatpush3.bf16.msra.mxu1 %v4386_v4 }
 0x234   :  { %v3698_v16 = vpop.eup %3697  ;;  %3470 = vmatprep.subr.bf16.mxu1 %v4390_v13 }
 0x235   :  { %v3700_v48 = vpop.eup %3699  ;;  %2896 = vmatprep.mubr.f32.mxu1 %v3698_v16  ;;  %v1144_v16 = vld [vmem:[#allocation7 + $0x70] sm:$0xff] }
 0x236   :  { %2897 = vmatmul.mubr.f32.gmra.mrb[46].mxu1 %v3700_v48  ;;  %v1145_v48 = vld [vmem:[#allocation7 + $0x78] sm:$0xff] }
 0x237   :  { %3472 = vmatpush3.bf16.msra.mxu1 %v4390_v13 }
 0x2ed   :  { %v2877_v8 = vpop.f32.mrb[32].mxu1 }
 0x2ee   :  { %v1051_v31 = vpop.f32.mrb[33].mxu1 }
 0x2ef   :  { %v3409_v12 = vpack.c.bf16 %v2877_v8, %v1051_v31  ;;  %v1476_v8 = vld [vmem:[#allocation16 + $0x8] sm:$0xff]  ;;  %v1477_v31 = vld [vmem:[#allocation16 + $0x10] sm:$0xff] }
 0x2f1   :  { %v2880_v41 = vpop.f32.mrb[34].mxu1  ;;  %3410 = vmatprep.subr.bf16.mxu0 %v3409_v12 }
 0x2f2   :  { %v1061_v15 = vpop.f32.mrb[35].mxu1  ;;  %3412 = vmatpush3.bf16.msra.mxu0 %v3409_v12  ;;  %v3473_v12 = vpack.c.bf16 %v1476_v8, %v1475_v22 }
 0x2f3   :  { %v3413_v59 = vpack.c.bf16 %v2880_v41, %v1061_v15  ;;  %v1478_v41 = vld [vmem:[#allocation16 + $0x18] sm:$0xff] }
 0x2f4   :  { %v3477_v15 = vpack.c.bf16 %v1478_v41, %v1477_v31 }
 0x2f5   :  { %v2883_v24 = vpop.f32.mrb[36].mxu1  ;;  %3414 = vmatprep.subr.bf16.mxu0 %v3413_v59 }
 0x2f6   :  { %v1071_v0 = vpop.f32.mrb[37].mxu1  ;;  %3416 = vmatpush3.bf16.msra.mxu0 %v3413_v59  ;;  %v1479_v59 = vld [vmem:[#allocation16 + $0x20] sm:$0xff] }
 0x2f7   :  { %v3417_v2 = vpack.c.bf16 %v2883_v24, %v1071_v0  ;;  %v1480_v24 = vld [vmem:[#allocation16 + $0x28] sm:$0xff] }
 0x2f8   :  { %v3481_v0 = vpack.c.bf16 %v1480_v24, %v1479_v59 }
 0x2f9   :  { %v2886_v38 = vpop.f32.mrb[38].mxu1  ;;  %3418 = vmatprep.subr.bf16.mxu0 %v3417_v2 }
 0x2fa   :  { %v1081_v57 = vpop.f32.mrb[39].mxu1  ;;  %3420 = vmatpush3.bf16.msra.mxu0 %v3417_v2  ;;  %v1481_v2 = vld [vmem:[#allocation16 + $0x30] sm:$0xff] }
 0x2fb   :  { %v3421_v23 = vpack.c.bf16 %v2886_v38, %v1081_v57  ;;  %v1482_v38 = vld [vmem:[#allocation16 + $0x38] sm:$0xff] }
 0x2fc   :  { %v3485_v57 = vpack.c.bf16 %v1482_v38, %v1481_v2 }
 0x2fd   :  { %v2889_v25 = vpop.f32.mrb[40].mxu1  ;;  %3422 = vmatprep.subr.bf16.mxu0 %v3421_v23 }
 0x2fe   :  { %v1091_v26 = vpop.f32.mrb[41].mxu1  ;;  %3424 = vmatpush3.bf16.msra.mxu0 %v3421_v23  ;;  %v2270_v23 = vld [vmem:[%s4635_s9] ss:$0 sm:$0xff] }
 0x2ff   :  { %v3425_v28 = vpack.c.bf16 %v2889_v25, %v1091_v26 }
 0x301   :  { %v2892_v21 = vpop.f32.mrb[42].mxu1  ;;  %3426 = vmatprep.subr.bf16.mxu0 %v3425_v28 }
 0x302   :  { %v1101_v34 = vpop.f32.mrb[43].mxu1  ;;  %3428 = vmatpush3.bf16.msra.mxu0 %v3425_v28 }
 0x303   :  { %v3429_v35 = vpack.c.bf16 %v2892_v21, %v1101_v34 }
 0x305   :  { %v2895_v37 = vpop.f32.mrb[44].mxu1  ;;  %3430 = vmatprep.subr.bf16.mxu0 %v3429_v35 }
 0x306   :  { %v1111_v42 = vpop.f32.mrb[45].mxu1  ;;  %3432 = vmatpush3.bf16.msra.mxu0 %v3429_v35 }
 0x307   :  { %v3433_v27 = vpack.c.bf16 %v2895_v37, %v1111_v42 }
 0x309   :  { %v2898_v33 = vpop.f32.mrb[46].mxu1  ;;  %3434 = vmatprep.subr.bf16.mxu0 %v3433_v27 }
 0x30a   :  { %v1121_v46 = vpop.f32.mrb[47].mxu1  ;;  %3436 = vmatpush3.bf16.msra.mxu0 %v3433_v27 }
 0x30b   :  { %v3437_v50 = vpack.c.bf16 %v2898_v33, %v1121_v46 }
 0x30d   :  { %3438 = vmatprep.subr.bf16.mxu0 %v3437_v50 }
 0x30e   :  { %3440 = vmatpush3.bf16.msra.mxu0 %v3437_v50 }
 0x30f   :  { %3474 = vmatprep.subr.bf16.mxu0 %v3473_v12 }
 0x311   :  { %2932 = vmatmul.mubr.f32.vlgmr.msra.gmra.mrb[32].mxu0 %v1131_v52 }
 0x312   :  { %2934 = vmatprep.mubr.f32.mxu0 %v1132_v53  ;;  %3476 = vmatpush3.bf16.msra.mxu0 %v3473_v12 }
 0x313   :  { %3478 = vmatprep.subr.bf16.mxu0 %v3477_v15 }
 0x315   :  { %2935 = vmatmul.mubr.f32.gmra.mrb[34].mxu0 %v1133_v39 }
 0x316   :  { %2937 = vmatprep.mubr.f32.mxu0 %v1134_v44  ;;  %3480 = vmatpush3.bf16.msra.mxu0 %v3477_v15 }
 0x317   :  { %3482 = vmatprep.subr.bf16.mxu0 %v3481_v0 }
 0x319   :  { %2938 = vmatmul.mubr.f32.gmra.mrb[36].mxu0 %v1135_v63 }
 0x31a   :  { %2940 = vmatprep.mubr.f32.mxu0 %v1136_v5  ;;  %3484 = vmatpush3.bf16.msra.mxu0 %v3481_v0 }
 0x31b   :  { %3486 = vmatprep.subr.bf16.mxu0 %v3485_v57 }
 0x31d   :  { %2941 = vmatmul.mubr.f32.gmra.mrb[38].mxu0 %v1137_v6 }
 0x31e   :  { %2943 = vmatprep.mubr.f32.mxu0 %v1138_v9  ;;  %3488 = vmatpush3.bf16.msra.mxu0 %v3485_v57 }
 0x321   :  { %2944 = vmatmul.mubr.f32.gmra.mrb[40].mxu0 %v1139_v3 }
 0x322   :  { %2946 = vmatprep.mubr.f32.mxu0 %v1140_v47 }
 0x325   :  { %2947 = vmatmul.mubr.f32.gmra.mrb[42].mxu0 %v1141_v55 }
 0x326   :  { %2949 = vmatprep.mubr.f32.mxu0 %v1142_v14 }
 0x329   :  { %2950 = vmatmul.mubr.f32.gmra.mrb[44].mxu0 %v1143_v1 }
 0x32a   :  { %2952 = vmatprep.mubr.f32.mxu0 %v1144_v16 }
 0x32d   :  { %2953 = vmatmul.mubr.f32.gmra.mrb[46].mxu0 %v1145_v48 }
 0x3e4   :  { %v2933_v25 = vpop.f32.mrb[32].mxu0 }
 0x3e5   :  { %v1225_v26 = vadd.f32 %v2933_v25, %v2270_v23  ;;  %v1219_v28 = vpop.f32.mrb[33].mxu0 }
 0x3e6   :  { %v1220_v21 = vadd.f32 %v2270_v23, %v1219_v28 }
 0x3e7   :  { %v1299_v37 = vmax.f32 %v1225_v26, 0.0 }
 0x3e8   :  { %v1298_v34 = vmax.f32 %v1220_v21, 0.0  ;;  %v2936_v35 = vpop.f32.mrb[34].mxu0 }
 0x3e9   :  { %v1235_v42 = vadd.f32 %v2936_v35, %v2270_v23  ;;  %v1229_v27 = vpop.f32.mrb[35].mxu0 }
 0x3ea   :  { %v1230_v33 = vadd.f32 %v2270_v23, %v1229_v27  ;;  %2987 = vmatprep.mubr.f32.mxu1 %v1298_v34 }
 0x3eb   :  { %2988 = vmatmul.mubr.f32.vlgmr.msra.gmra.mrb[48].mxu1 %v1299_v37  ;;  %v1301_v52 = vmax.f32 %v1235_v42, 0.0 }
 0x3ec   :  { %v1300_v46 = vmax.f32 %v1230_v33, 0.0  ;;  %v2939_v50 = vpop.f32.mrb[36].mxu0  ;;  %v1483_v33 = vld [vmem:[#allocation16 + $0x40] sm:$0xff] }
 0x3ed   :  { %v1245_v53 = vadd.f32 %v2939_v50, %v2270_v23  ;;  %v1239_v39 = vpop.f32.mrb[37].mxu0 }
 0x3ee   :  { %v1240_v44 = vadd.f32 %v2270_v23, %v1239_v39  ;;  %2990 = vmatprep.mubr.f32.mxu1 %v1300_v46  ;;  %v1484_v46 = vld [vmem:[#allocation16 + $0x48] sm:$0xff] }
 0x3ef   :  { %2991 = vmatmul.mubr.f32.gmra.mrb[50].mxu1 %v1301_v52  ;;  %v1303_v6 = vmax.f32 %v1245_v53, 0.0  ;;  %v3489_v50 = vpack.c.bf16 %v1484_v46, %v1483_v33  ;;  %v1485_v52 = vld [vmem:[#allocation16 + $0x50] sm:$0xff]  ;;  %v1486_v53 = vld [vmem:[#allocation16 + $0x58] sm:$0xff]  ;;  %v1636_v46 = vld [vmem:[#allocation8] sm:$0xff] }
 0x3f0   :  { %v1302_v63 = vmax.f32 %v1240_v44, 0.0  ;;  %v2942_v5 = vpop.f32.mrb[38].mxu0  ;;  %v3493_v39 = vpack.c.bf16 %v1486_v53, %v1485_v52  ;;  %v1487_v44 = vld [vmem:[#allocation16 + $0x60] sm:$0xff] }
 0x3f1   :  { %v1255_v9 = vadd.f32 %v2942_v5, %v2270_v23  ;;  %v1249_v3 = vpop.f32.mrb[39].mxu0  ;;  %3490 = vmatprep.subr.bf16.mxu0 %v3489_v50 }
 0x3f2   :  { %v1250_v47 = vadd.f32 %v2270_v23, %v1249_v3  ;;  %2993 = vmatprep.mubr.f32.mxu1 %v1302_v63  ;;  %3492 = vmatpush3.bf16.msra.mxu0 %v3489_v50  ;;  %v1488_v63 = vld [vmem:[#allocation16 + $0x68] sm:$0xff] }
 0x3f3   :  { %2994 = vmatmul.mubr.f32.gmra.mrb[52].mxu1 %v1303_v6  ;;  %v1305_v1 = vmax.f32 %v1255_v9, 0.0  ;;  %3494 = vmatprep.subr.bf16.mxu0 %v3493_v39  ;;  %v3497_v5 = vpack.c.bf16 %v1488_v63, %v1487_v44  ;;  %v1490_v6 = vld [vmem:[#allocation16 + $0x78] sm:$0xff] }
 0x3f4   :  { %v1304_v55 = vmax.f32 %v1250_v47, 0.0  ;;  %v2945_v14 = vpop.f32.mrb[40].mxu0 }
 0x3f5   :  { %v1265_v16 = vadd.f32 %v2945_v14, %v2270_v23  ;;  %v1259_v48 = vpop.f32.mrb[41].mxu0 }
 0x3f6   :  { %v1260_v22 = vadd.f32 %v2270_v23, %v1259_v48  ;;  %2996 = vmatprep.mubr.f32.mxu1 %v1304_v55  ;;  %3496 = vmatpush3.bf16.msra.mxu0 %v3493_v39 }
 0x3f7   :  { %2997 = vmatmul.mubr.f32.gmra.mrb[54].mxu1 %v1305_v1  ;;  %v1307_v12 = vmax.f32 %v1265_v16, 0.0  ;;  %3498 = vmatprep.subr.bf16.mxu0 %v3497_v5 }
 0x3f8   :  { %v1306_v8 = vmax.f32 %v1260_v22, 0.0  ;;  %v2948_v31 = vpop.f32.mrb[42].mxu0 }
 0x3f9   :  { %v1275_v41 = vadd.f32 %v2948_v31, %v2270_v23  ;;  %v1269_v15 = vpop.f32.mrb[43].mxu0 }
 0x3fa   :  { %v1270_v59 = vadd.f32 %v2270_v23, %v1269_v15  ;;  %2999 = vmatprep.mubr.f32.mxu1 %v1306_v8  ;;  %3500 = vmatpush3.bf16.msra.mxu0 %v3497_v5 }
 0x3fb   :  { %3000 = vmatmul.mubr.f32.gmra.mrb[56].mxu1 %v1307_v12  ;;  %v1309_v2 = vmax.f32 %v1275_v41, 0.0 }
 0x3fc   :  { %v1308_v24 = vmax.f32 %v1270_v59, 0.0  ;;  %v2951_v0 = vpop.f32.mrb[44].mxu0 }
 0x3fd   :  { %v1285_v38 = vadd.f32 %v2951_v0, %v2270_v23  ;;  %v1279_v57 = vpop.f32.mrb[45].mxu0 }
 0x3fe   :  { %v1280_v25 = vadd.f32 %v2270_v23, %v1279_v57  ;;  %3002 = vmatprep.mubr.f32.mxu1 %v1308_v24 }
 0x3ff   :  { %3003 = vmatmul.mubr.f32.gmra.mrb[58].mxu1 %v1309_v2  ;;  %v1311_v21 = vmax.f32 %v1285_v38, 0.0 }
 0x400   :  { %v1310_v26 = vmax.f32 %v1280_v25, 0.0  ;;  %v2954_v28 = vpop.f32.mrb[46].mxu0 }
 0x401   :  { %v1295_v34 = vadd.f32 %v2954_v28, %v2270_v23  ;;  %v1289_v35 = vpop.f32.mrb[47].mxu0 }
 0x402   :  { %v1290_v37 = vadd.f32 %v2270_v23, %v1289_v35  ;;  %3005 = vmatprep.mubr.f32.mxu1 %v1310_v26  ;;  %v1489_v23 = vld [vmem:[#allocation16 + $0x70] sm:$0xff] }
 0x403   :  { %3006 = vmatmul.mubr.f32.gmra.mrb[60].mxu1 %v1311_v21  ;;  %v1313_v27 = vmax.f32 %v1295_v34, 0.0  ;;  %v3501_v9 = vpack.c.bf16 %v1490_v6, %v1489_v23 }
 0x404   :  { %v1312_v42 = vmax.f32 %v1290_v37, 0.0 }
 0x405   :  { %3502 = vmatprep.subr.bf16.mxu0 %v3501_v9 }
 0x406   :  { %3008 = vmatprep.mubr.f32.mxu1 %v1312_v42  ;;  %3504 = vmatpush3.bf16.msra.mxu0 %v3501_v9 }
 0x407   :  { %3009 = vmatmul.mubr.f32.gmra.mrb[62].mxu1 %v1313_v27  ;;  %3538 = vmatprep.subr.bf16.mxu0 %v4362_v11 }
 0x408   :  { %3099 = vmatprep.mubr.f32.mxu1 %v1636_v46 }
 0x4be   :  { %v2989_v3 = vpop.f32.mrb[48].mxu1 }
 0x4bf   :  { %v1386_v47 = vadd.f32 %v2989_v3, %v4428_v56  ;;  %v1380_v55 = vpop.f32.mrb[49].mxu1 }
 0x4c0   :  { %v1381_v14 = vadd.f32 %v1380_v55, %v4431_v62 }
 0x4c2   :  { %3701 = vtanh.f32 %v1381_v14  ;;  %v2992_v1 = vpop.f32.mrb[50].mxu1 }
 0x4c3   :  { %3703 = vtanh.f32 %v1386_v47  ;;  %v1396_v16 = vadd.f32 %v2992_v1, %v4438_v10  ;;  %v1390_v48 = vpop.f32.mrb[51].mxu1 }
 0x4c4   :  { %v1391_v22 = vadd.f32 %v1390_v48, %v4441_v61 }
 0x4c6   :  { %3705 = vtanh.f32 %v1391_v22  ;;  %v2995_v8 = vpop.f32.mrb[52].mxu1 }
 0x4c7   :  { %3707 = vtanh.f32 %v1396_v16  ;;  %v1406_v31 = vadd.f32 %v2995_v8, %v4446_v17  ;;  %v1400_v12 = vpop.f32.mrb[53].mxu1 }
 0x4c8   :  { %v1401_v41 = vadd.f32 %v1400_v12, %v4449_v29 }
 0x4ca   :  { %3709 = vtanh.f32 %v1401_v41  ;;  %v2998_v15 = vpop.f32.mrb[54].mxu1  ;;  %v1637_v41 = vld [vmem:[#allocation8 + $0x8] sm:$0xff] }
 0x4cb   :  { %3711 = vtanh.f32 %v1406_v31  ;;  %v1416_v59 = vadd.f32 %v2998_v15, %v4454_v36  ;;  %v1410_v24 = vpop.f32.mrb[55].mxu1  ;;  %v1638_v15 = vld [vmem:[#allocation8 + $0x10] sm:$0xff] }
 0x4cc   :  { %v3702_v0 = vpop.eup %3701  ;;  %v1411_v10 = vadd.f32 %v1410_v24, %v4457_v51  ;;  %v1640_v24 = vld [vmem:[#allocation8 + $0x20] sm:$0xff] }
 0x4cd   :  { %v3704_v2 = vpop.eup %3703  ;;  %3043 = vmatprep.mubr.f32.mxu0 %v3702_v0  ;;  %v1641_v0 = vld [vmem:[#allocation8 + $0x28] sm:$0xff] }
 0x4ce   :  { %3713 = vtanh.f32 %v1411_v10  ;;  %v3001_v61 = vpop.f32.mrb[56].mxu1  ;;  %3044 = vmatmul.mubr.f32.vlgmr.msra.gmra.mrb[48].mxu0 %v3704_v2  ;;  %v1642_v10 = vld [vmem:[#allocation8 + $0x30] sm:$0xff]  ;;  %v1643_v2 = vld [vmem:[#allocation8 + $0x38] sm:$0xff] }
 0x4cf   :  { %3715 = vtanh.f32 %v1416_v59  ;;  %v1426_v17 = vadd.f32 %v3001_v61, %v4462_v18  ;;  %v1420_v38 = vpop.f32.mrb[57].mxu1  ;;  %3540 = vmatpush3.bf16.msra.mxu0 %v4362_v11  ;;  %v1639_v59 = vld [vmem:[#allocation8 + $0x18] sm:$0xff]  ;;  %v1644_v61 = vld [vmem:[#allocation8 + $0x40] sm:$0xff] }
 0x4d0   :  { %v3706_v29 = vpop.eup %3705  ;;  %v1421_v57 = vadd.f32 %v1420_v38, %v4465_v19  ;;  %3542 = vmatprep.subr.bf16.mxu0 %v4366_v20  ;;  %v1646_v38 = vld [vmem:[#allocation8 + $0x50] sm:$0xff] }
 0x4d1   :  { %v3708_v36 = vpop.eup %3707  ;;  %3046 = vmatprep.mubr.f32.mxu0 %v3706_v29  ;;  %v1647_v29 = vld [vmem:[#allocation8 + $0x58] sm:$0xff] }
 0x4d2   :  { %3717 = vtanh.f32 %v1421_v57  ;;  %v3004_v51 = vpop.f32.mrb[58].mxu1  ;;  %3047 = vmatmul.mubr.f32.gmra.mrb[50].mxu0 %v3708_v36  ;;  %v1648_v57 = vld [vmem:[#allocation8 + $0x60] sm:$0xff]  ;;  %v1649_v36 = vld [vmem:[#allocation8 + $0x68] sm:$0xff] }
 0x4d3   :  { %3719 = vtanh.f32 %v1426_v17  ;;  %v1436_v25 = vadd.f32 %v3004_v51, %v4473_v7  ;;  %v1430_v26 = vpop.f32.mrb[59].mxu1  ;;  %3544 = vmatpush3.bf16.msra.mxu0 %v4366_v20  ;;  %v1645_v17 = vld [vmem:[#allocation8 + $0x48] sm:$0xff]  ;;  %v1650_v51 = vld [vmem:[#allocation8 + $0x70] sm:$0xff] }
 0x4d4   :  { %v3710_v18 = vpop.eup %3709  ;;  %v1431_v28 = vadd.f32 %v1430_v26, %v4477_v32  ;;  %3546 = vmatprep.subr.bf16.mxu0 %v4370_v30  ;;  %v4552_v26 = vld [vmem:[%s4637_s11] ss:$0 sm:$0xff] }
 0x4d5   :  { %v3712_v11 = vpop.eup %3711  ;;  %3049 = vmatprep.mubr.f32.mxu0 %v3710_v18 }
 0x4d6   :  { %3721 = vtanh.f32 %v1431_v28  ;;  %v3007_v19 = vpop.f32.mrb[60].mxu1  ;;  %3050 = vmatmul.mubr.f32.gmra.mrb[52].mxu0 %v3712_v11 }
 0x4d7   :  { %3723 = vtanh.f32 %v1436_v25  ;;  %v1446_v21 = vadd.f32 %v3007_v19, %v4485_v43  ;;  %v1440_v34 = vpop.f32.mrb[61].mxu1  ;;  %3548 = vmatpush3.bf16.msra.mxu0 %v4370_v30  ;;  %v1651_v25 = vld [vmem:[#allocation8 + $0x78] sm:$0xff] }
 0x4d8   :  { %v3714_v7 = vpop.eup %3713  ;;  %v1441_v35 = vadd.f32 %v1440_v34, %v4489_v45  ;;  %3550 = vmatprep.subr.bf16.mxu0 %v4374_v40 }
 0x4d9   :  { %v3716_v20 = vpop.eup %3715  ;;  %3052 = vmatprep.mubr.f32.mxu0 %v3714_v7 }
 0x4da   :  { %3725 = vtanh.f32 %v1441_v35  ;;  %v3010_v32 = vpop.f32.mrb[62].mxu1  ;;  %3053 = vmatmul.mubr.f32.gmra.mrb[54].mxu0 %v3716_v20 }
 0x4db   :  { %3727 = vtanh.f32 %v1446_v21  ;;  %v1456_v37 = vadd.f32 %v3010_v32, %v4497_v54  ;;  %v1450_v42 = vpop.f32.mrb[63].mxu1  ;;  %3552 = vmatpush3.bf16.msra.mxu0 %v4374_v40 }
 0x4dc   :  { %v3718_v43 = vpop.eup %3717  ;;  %v1451_v27 = vadd.f32 %v1450_v42, %v4501_v60  ;;  %3554 = vmatprep.subr.bf16.mxu0 %v4378_v49 }
 0x4dd   :  { %v3720_v30 = vpop.eup %3719  ;;  %3055 = vmatprep.mubr.f32.mxu0 %v3718_v43  ;;  %v2059_v43 = vld [vmem:[#allocation17] sm:$0xff] }
 0x4de   :  { %3729 = vtanh.f32 %v1451_v27  ;;  %3056 = vmatmul.mubr.f32.gmra.mrb[56].mxu0 %v3720_v30  ;;  %v2060_v27 = vld [vmem:[#allocation17 + $0x8] sm:$0xff]  ;;  %v2147_v30 = vld [vmem:[#allocation19] sm:$0xff] }
 0x4df   :  { %3731 = vtanh.f32 %v1456_v37  ;;  %3556 = vmatpush3.bf16.msra.mxu0 %v4378_v49 }
 0x4e0   :  { %v3722_v45 = vpop.eup %3721  ;;  %3558 = vmatprep.subr.bf16.mxu0 %v4382_v58 }
 0x4e1   :  { %v3724_v33 = vpop.eup %3723  ;;  %3058 = vmatprep.mubr.f32.mxu0 %v3722_v45 }
 0x4e2   :  { %3059 = vmatmul.mubr.f32.gmra.mrb[58].mxu0 %v3724_v33 }
 0x4e3   :  { %3560 = vmatpush3.bf16.msra.mxu0 %v4382_v58 }
 0x4e4   :  { %v3726_v40 = vpop.eup %3725  ;;  %3562 = vmatprep.subr.bf16.mxu0 %v4386_v4 }
 0x4e5   :  { %v3728_v54 = vpop.eup %3727  ;;  %3061 = vmatprep.mubr.f32.mxu0 %v3726_v40  ;;  %v3570_v40 = vpack.c.bf16 %v2060_v27, %v2059_v43  ;;  %v2069_v43 = vld [vmem:[#allocation17 + $0x50] sm:$0xff]  ;;  %v2070_v27 = vld [vmem:[#allocation17 + $0x58] sm:$0xff] }
 0x4e6   :  { %3062 = vmatmul.mubr.f32.gmra.mrb[60].mxu0 %v3728_v54  ;;  %v2148_v54 = vld [vmem:[#allocation19 + $0x8] sm:$0xff] }
 0x4e7   :  { %3564 = vmatpush3.bf16.msra.mxu0 %v4386_v4  ;;  %v3594_v46 = vpack.c.bf16 %v2148_v54, %v2147_v30  ;;  %v2157_v30 = vld [vmem:[#allocation19 + $0x50] sm:$0xff]  ;;  %v2158_v54 = vld [vmem:[#allocation19 + $0x58] sm:$0xff] }
 0x4e8   :  { %v3730_v60 = vpop.eup %3729  ;;  %3566 = vmatprep.subr.bf16.mxu0 %v4390_v13 }
 0x4e9   :  { %v3732_v49 = vpop.eup %3731  ;;  %3064 = vmatprep.mubr.f32.mxu0 %v3730_v60 }
 0x4ea   :  { %3065 = vmatmul.mubr.f32.gmra.mrb[62].mxu0 %v3732_v49  ;;  %v4058_v49 = vmov 0.0|0.0  }
 0x4eb   :  { %3568 = vmatpush3.bf16.msra.mxu0 %v4390_v13 }
 0x4ec   :  { %3593 = vmatprep.subr.bf16.mxu0 %v4058_v49 }
 0x5a1   :  { %v3045_v50 = vpop.f32.mrb[48].mxu0 }
 0x5a2   :  { %v1557_v58 = vpop.f32.mrb[49].mxu0 }
 0x5a3   :  { %v3505_v52 = vpack.c.bf16 %v3045_v50, %v1557_v58 }
 0x5a5   :  { %v3048_v53 = vpop.f32.mrb[50].mxu0  ;;  %3506 = vmatprep.subr.bf16.mxu1 %v3505_v52 }
 0x5a6   :  { %v1567_v39 = vpop.f32.mrb[51].mxu0  ;;  %3508 = vmatpush3.bf16.msra.mxu1 %v3505_v52 }
 0x5a7   :  { %v3509_v44 = vpack.c.bf16 %v3048_v53, %v1567_v39  ;;  %v2061_v53 = vld [vmem:[#allocation17 + $0x10] sm:$0xff]  ;;  %v2062_v39 = vld [vmem:[#allocation17 + $0x18] sm:$0xff] }
 0x5a9   :  { %v3051_v63 = vpop.f32.mrb[52].mxu0  ;;  %3510 = vmatprep.subr.bf16.mxu1 %v3509_v44 }
 0x5aa   :  { %v1577_v4 = vpop.f32.mrb[53].mxu0  ;;  %3512 = vmatpush3.bf16.msra.mxu1 %v3509_v44  ;;  %v2149_v44 = vld [vmem:[#allocation19 + $0x10] sm:$0xff] }
 0x5ab   :  { %v3513_v5 = vpack.c.bf16 %v3051_v63, %v1577_v4 }
 0x5ad   :  { %v3054_v23 = vpop.f32.mrb[54].mxu0  ;;  %3514 = vmatprep.subr.bf16.mxu1 %v3513_v5 }
 0x5ae   :  { %v1587_v6 = vpop.f32.mrb[55].mxu0  ;;  %3516 = vmatpush3.bf16.msra.mxu1 %v3513_v5  ;;  %v3573_v5 = vpack.c.bf16 %v2062_v39, %v2061_v53  ;;  %v2159_v53 = vld [vmem:[#allocation19 + $0x60] sm:$0xff] }
 0x5af   :  { %v3517_v13 = vpack.c.bf16 %v3054_v23, %v1587_v6  ;;  %v2150_v23 = vld [vmem:[#allocation19 + $0x18] sm:$0xff] }
 0x5b1   :  { %v3057_v9 = vpop.f32.mrb[56].mxu0  ;;  %3518 = vmatprep.subr.bf16.mxu1 %v3517_v13 }
 0x5b2   :  { %v1597_v3 = vpop.f32.mrb[57].mxu0  ;;  %3520 = vmatpush3.bf16.msra.mxu1 %v3517_v13  ;;  %v3597_v13 = vpack.c.bf16 %v2150_v23, %v2149_v44  ;;  %v2160_v44 = vld [vmem:[#allocation19 + $0x68] sm:$0xff]  ;;  %v2074_v23 = vld [vmem:[#allocation17 + $0x78] sm:$0xff] }
 0x5b3   :  { %v3521_v47 = vpack.c.bf16 %v3057_v9, %v1597_v3 }
 0x5b5   :  { %v3060_v55 = vpop.f32.mrb[58].mxu0  ;;  %3522 = vmatprep.subr.bf16.mxu1 %v3521_v47 }
 0x5b6   :  { %v1607_v14 = vpop.f32.mrb[59].mxu0  ;;  %3524 = vmatpush3.bf16.msra.mxu1 %v3521_v47 }
 0x5b7   :  { %v3525_v1 = vpack.c.bf16 %v3060_v55, %v1607_v14  ;;  %v2063_v55 = vld [vmem:[#allocation17 + $0x20] sm:$0xff]  ;;  %v2064_v14 = vld [vmem:[#allocation17 + $0x28] sm:$0xff] }
 0x5b9   :  { %v3063_v16 = vpop.f32.mrb[60].mxu0  ;;  %3526 = vmatprep.subr.bf16.mxu1 %v3525_v1 }
 0x5ba   :  { %v1617_v48 = vpop.f32.mrb[61].mxu0  ;;  %3528 = vmatpush3.bf16.msra.mxu1 %v3525_v1  ;;  %v2151_v1 = vld [vmem:[#allocation19 + $0x20] sm:$0xff] }
 0x5bb   :  { %v3529_v22 = vpack.c.bf16 %v3063_v16, %v1617_v48 }
 0x5bd   :  { %v3066_v8 = vpop.f32.mrb[62].mxu0  ;;  %3530 = vmatprep.subr.bf16.mxu1 %v3529_v22 }
 0x5be   :  { %v1627_v31 = vpop.f32.mrb[63].mxu0  ;;  %3532 = vmatpush3.bf16.msra.mxu1 %v3529_v22  ;;  %v3576_v22 = vpack.c.bf16 %v2064_v14, %v2063_v55 }
 0x5bf   :  { %v3533_v12 = vpack.c.bf16 %v3066_v8, %v1627_v31  ;;  %v2152_v8 = vld [vmem:[#allocation19 + $0x28] sm:$0xff] }
 0x5c1   :  { %3534 = vmatprep.subr.bf16.mxu1 %v3533_v12 }
 0x5c2   :  { %3536 = vmatpush3.bf16.msra.mxu1 %v3533_v12  ;;  %v3600_v12 = vpack.c.bf16 %v2152_v8, %v2151_v1 }
 0x5c3   :  { %3569 = vmatprep.subr.bf16.mxu1 %v4058_v49 }
 0x5c5   :  { %3100 = vmatmul.mubr.f32.vlgmr.msra.gmra.mrb[64].mxu1 %v1637_v41 }
 0x5c6   :  { %3102 = vmatprep.mubr.f32.mxu1 %v1638_v15  ;;  %3571 = vmatpush3.bf16.msra.mxu1 %v3570_v40  ;;  %v3585_v40 = vpack.c.bf16 %v2070_v27, %v2069_v43 }
 0x5c7   :  { %3572 = vmatprep.subr.bf16.mxu1 %v4058_v49 }
 0x5c9   :  { %3103 = vmatmul.mubr.f32.gmra.mrb[66].mxu1 %v1639_v59 }
 0x5ca   :  { %3105 = vmatprep.mubr.f32.mxu1 %v1640_v24  ;;  %3574 = vmatpush3.bf16.msra.mxu1 %v3573_v5  ;;  %v2065_v24 = vld [vmem:[#allocation17 + $0x30] sm:$0xff] }
 0x5cb   :  { %3575 = vmatprep.subr.bf16.mxu1 %v4058_v49  ;;  %v2073_v5 = vld [vmem:[#allocation17 + $0x70] sm:$0xff] }
 0x5cd   :  { %3106 = vmatmul.mubr.f32.gmra.mrb[68].mxu1 %v1641_v0  ;;  %v2066_v0 = vld [vmem:[#allocation17 + $0x38] sm:$0xff] }
 0x5ce   :  { %3108 = vmatprep.mubr.f32.mxu1 %v1642_v10  ;;  %3577 = vmatpush3.bf16.msra.mxu1 %v3576_v22  ;;  %v2153_v10 = vld [vmem:[#allocation19 + $0x30] sm:$0xff] }
 0x5cf   :  { %3578 = vmatprep.subr.bf16.mxu1 %v4058_v49 }
 0x5d1   :  { %3109 = vmatmul.mubr.f32.gmra.mrb[70].mxu1 %v1643_v2 }
 0x5d2   :  { %3111 = vmatprep.mubr.f32.mxu1 %v1644_v61 }
 0x5d5   :  { %3112 = vmatmul.mubr.f32.gmra.mrb[72].mxu1 %v1645_v17  ;;  %v3579_v17 = vpack.c.bf16 %v2066_v0, %v2065_v24 }
 0x5d6   :  { %3114 = vmatprep.mubr.f32.mxu1 %v1646_v38  ;;  %v2154_v38 = vld [vmem:[#allocation19 + $0x38] sm:$0xff] }
 0x5d7   :  { %3580 = vmatpush3.bf16.msra.mxu1 %v3579_v17 }
 0x5d8   :  { %3581 = vmatprep.subr.bf16.mxu1 %v4058_v49 }
 0x5d9   :  { %3115 = vmatmul.mubr.f32.gmra.mrb[74].mxu1 %v1647_v29 }
 0x5da   :  { %3117 = vmatprep.mubr.f32.mxu1 %v1648_v57  ;;  %v3603_v57 = vpack.c.bf16 %v2154_v38, %v2153_v10 }
 0x5dd   :  { %3118 = vmatmul.mubr.f32.gmra.mrb[76].mxu1 %v1649_v36 }
 0x5de   :  { %3120 = vmatprep.mubr.f32.mxu1 %v1650_v51 }
 0x5e1   :  { %3121 = vmatmul.mubr.f32.gmra.mrb[78].mxu1 %v1651_v25 }
 0x698   :  { %v3101_v18 = vpop.f32.mrb[64].mxu1 }
 0x699   :  { %v1731_v28 = vadd.f32 %v3101_v18, %v4552_v26  ;;  %v1725_v11 = vpop.f32.mrb[65].mxu1  ;;  %v2067_v18 = vld [vmem:[#allocation17 + $0x40] sm:$0xff] }
 0x69a   :  { %v1726_v19 = vadd.f32 %v4552_v26, %v1725_v11  ;;  %v2155_v11 = vld [vmem:[#allocation19 + $0x40] sm:$0xff] }
 0x69b   :  { %v1805_v34 = vmax.f32 %v1731_v28, 0.0  ;;  %v2068_v28 = vld [vmem:[#allocation17 + $0x48] sm:$0xff] }
 0x69c   :  { %v1804_v21 = vmax.f32 %v1726_v19, 0.0  ;;  %v3104_v7 = vpop.f32.mrb[66].mxu1 }
 0x69d   :  { %v1735_v35 = vpop.f32.mrb[67].mxu1  ;;  %v1741_v32 = vadd.f32 %v3104_v7, %v4552_v26  ;;  %v2156_v7 = vld [vmem:[#allocation19 + $0x48] sm:$0xff] }
 0x69e   :  { %3155 = vmatprep.mubr.f32.mxu0 %v1804_v21  ;;  %v1736_v20 = vadd.f32 %v4552_v26, %v1735_v35 }
 0x69f   :  { %3156 = vmatmul.mubr.f32.vlgmr.msra.gmra.mrb[64].mxu0 %v1805_v34  ;;  %v1807_v45 = vmax.f32 %v1741_v32, 0.0  ;;  %v3582_v34 = vpack.c.bf16 %v2068_v28, %v2067_v18 }
 0x6a0   :  { %v1806_v37 = vmax.f32 %v1736_v20, 0.0  ;;  %v3107_v42 = vpop.f32.mrb[68].mxu1  ;;  %3595 = vmatpush3.bf16.msra.mxu0 %v3594_v46  ;;  %v3606_v20 = vpack.c.bf16 %v2156_v7, %v2155_v11  ;;  %v2163_v7 = vld [vmem:[%s4641_s15] sm:$0x1] }
 0x6a1   :  { %v1745_v33 = vpop.f32.mrb[69].mxu1  ;;  %v1751_v50 = vadd.f32 %v3107_v42, %v4552_v26  ;;  %3596 = vmatprep.subr.bf16.mxu0 %v4058_v49  ;;  %3583 = vmatpush3.bf16.msra.mxu1 %v3582_v34  ;;  %v2075_v34 = vld [vmem:[%s4639_s13] sm:$0x1]  ;;  %s3983_s13 = scalar_lea.vmem %s2242_s8, 16 }
 0x6a2   :  { %v1746_v60 = vadd.f32 %v4552_v26, %v1745_v33  ;;  %3158 = vmatprep.mubr.f32.mxu0 %v1806_v37  ;;  %3584 = vmatprep.subr.bf16.mxu1 %v4058_v49  ;;  %p3984_p4 = scmp.ne.s32.totalorder %s2242_s8, %s3983_s13  ;;  %p3989_p6 = scmp.lt.s32.totalorder %s3987_s1, %s3983_s13 }
 0x6a3   :  { %v1809_v63 = vmax.f32 %v1751_v50, 0.0  ;;  %3159 = vmatmul.mubr.f32.gmra.mrb[66].mxu0 %v1807_v45  ;;  %v3609_v50 = vpack.c.bf16 %v2158_v54, %v2157_v30 }
 0x6a4   :  { %v1808_v58 = vmax.f32 %v1746_v60, 0.0  ;;  %v3110_v52 = vpop.f32.mrb[70].mxu1  ;;  %3598 = vmatpush3.bf16.msra.mxu0 %v3597_v13  ;;  %v2162_v13 = vld [vmem:[#allocation19 + $0x78] sm:$0xff]  ;;  %p3990_p7 = por %p3989_p6, %p3988_p5 }
 0x6a5   :  { %v1755_v4 = vpop.f32.mrb[71].mxu1  ;;  %v1761_v9 = vadd.f32 %v3110_v52, %v4552_v26  ;;  %3599 = vmatprep.subr.bf16.mxu0 %v4058_v49  ;;  %v2072_v52 = vld [vmem:[#allocation17 + $0x68] sm:$0xff]  ;;  %3586 = vmatpush3.bf16.msra.mxu1 %v3585_v40 }
 0x6a6   :  { %v1756_v6 = vadd.f32 %v4552_v26, %v1755_v4  ;;  %3161 = vmatprep.mubr.f32.mxu0 %v1808_v58  ;;  %v2071_v58 = vld [vmem:[#allocation17 + $0x60] sm:$0xff]  ;;  %3587 = vmatprep.subr.bf16.mxu1 %v4058_v49  ;;  %v3612_v4 = vpack.c.bf16 %v2160_v44, %v2159_v53  ;;  %p3991_p8 = pnand %p3990_p7, %p3984_p4 }
 0x6a7   :  { %v1811_v16 = vmax.f32 %v1761_v9, 0.0  ;;  %3162 = vmatmul.mubr.f32.gmra.mrb[68].mxu0 %v1809_v63  ;;  %v3588_v39 = vpack.c.bf16 %v2072_v52, %v2071_v58  ;;  %v4060_v9 = vmov 0.0  }
 0x6a8   :  { %v1810_v3 = vmax.f32 %v1756_v6, 0.0  ;;  %v3113_v47 = vpop.f32.mrb[72].mxu1  ;;  %3601 = vmatpush3.bf16.msra.mxu0 %v3600_v12  ;;  %3211 = vmatprep.mubr.msk.f32.mxu1 %vm4059_vm0, %v4060_v9 }
 0x6a9   :  { %v1765_v48 = vpop.f32.mrb[73].mxu1  ;;  %v1771_v41 = vadd.f32 %v3113_v47, %v4552_v26  ;;  %3602 = vmatprep.subr.bf16.mxu0 %v4058_v49  ;;  %3589 = vmatpush3.bf16.msra.mxu1 %v3588_v39 }
 0x6aa   :  { %v1766_v31 = vadd.f32 %v4552_v26, %v1765_v48  ;;  %3164 = vmatprep.mubr.f32.mxu0 %v1810_v3  ;;  %v3591_v3 = vpack.c.bf16 %v2074_v23, %v2073_v5  ;;  %3590 = vmatprep.subr.bf16.mxu1 %v4058_v49 }
 0x6ab   :  { %v1813_v2 = vmax.f32 %v1771_v41, 0.0  ;;  %3165 = vmatmul.mubr.f32.gmra.mrb[70].mxu0 %v1811_v16 }
 0x6ac   :  { %v1812_v15 = vmax.f32 %v1766_v31, 0.0  ;;  %v3116_v59 = vpop.f32.mrb[74].mxu1  ;;  %3604 = vmatpush3.bf16.msra.mxu0 %v3603_v57 }
 0x6ad   :  { %v1775_v61 = vpop.f32.mrb[75].mxu1  ;;  %v1781_v36 = vadd.f32 %v3116_v59, %v4552_v26  ;;  %3605 = vmatprep.subr.bf16.mxu0 %v4058_v49  ;;  %3592 = vmatpush3.bf16.msra.mxu1 %v3591_v3 }
 0x6ae   :  { %v1776_v29 = vadd.f32 %v4552_v26, %v1775_v61  ;;  %3167 = vmatprep.mubr.f32.mxu0 %v1812_v15 }
 0x6af   :  { %v1815_v19 = vmax.f32 %v1781_v36, 0.0  ;;  %3168 = vmatmul.mubr.f32.gmra.mrb[72].mxu0 %v1813_v2 }
 0x6b0   :  { %v1814_v51 = vmax.f32 %v1776_v29, 0.0  ;;  %v3119_v25 = vpop.f32.mrb[76].mxu1  ;;  %3607 = vmatpush3.bf16.msra.mxu0 %v3606_v20 }
 0x6b1   :  { %v1785_v21 = vpop.f32.mrb[77].mxu1  ;;  %v1791_v32 = vadd.f32 %v3119_v25, %v4552_v26  ;;  %3608 = vmatprep.subr.bf16.mxu0 %v4058_v49 }
 0x6b2   :  { %v1786_v35 = vadd.f32 %v4552_v26, %v1785_v21  ;;  %3170 = vmatprep.mubr.f32.mxu0 %v1814_v51 }
 0x6b3   :  { %v1817_v45 = vmax.f32 %v1791_v32, 0.0  ;;  %3171 = vmatmul.mubr.f32.gmra.mrb[74].mxu0 %v1815_v19 }
 0x6b4   :  { %v1816_v37 = vmax.f32 %v1786_v35, 0.0  ;;  %v3122_v42 = vpop.f32.mrb[78].mxu1  ;;  %3610 = vmatpush3.bf16.msra.mxu0 %v3609_v50 }
 0x6b5   :  { %v1795_v33 = vpop.f32.mrb[79].mxu1  ;;  %v1801_v60 = vadd.f32 %v3122_v42, %v4552_v26  ;;  %3611 = vmatprep.subr.bf16.mxu0 %v4058_v49 }
 0x6b6   :  { %v1796_v46 = vadd.f32 %v4552_v26, %v1795_v33  ;;  %3173 = vmatprep.mubr.f32.mxu0 %v1816_v37  ;;  %v2161_v26 = vld [vmem:[#allocation19 + $0x70] sm:$0xff] }
 0x6b7   :  { %v1819_v6 = vmax.f32 %v1801_v60, 0.0  ;;  %3174 = vmatmul.mubr.f32.gmra.mrb[76].mxu0 %v1817_v45  ;;  %v3615_v47 = vpack.c.bf16 %v2162_v13, %v2161_v26 }
 0x6b8   :  { %v1818_v63 = vmax.f32 %v1796_v46, 0.0  ;;  %3613 = vmatpush3.bf16.msra.mxu0 %v3612_v4 }
 0x6b9   :  { %3614 = vmatprep.subr.bf16.mxu0 %v4058_v49 }
 0x6ba   :  { %3176 = vmatprep.mubr.f32.mxu0 %v1818_v63 }
 0x6bb   :  { %3177 = vmatmul.mubr.f32.gmra.mrb[78].mxu0 %v1819_v6 }
 0x6bc   :  { %3246 = vmatprep.mubr.msk.f32.mxu0 %vm4059_vm0, %v4060_v9  ;;  %3616 = vmatpush3.bf16.msra.mxu0 %v3615_v47 }
 0x772   :  { %v3157_v55 = vpop.f32.mrb[64].mxu0 }
 0x773   :  { %v1892_v14 = vadd.f32 %v3157_v55, %v4428_v56  ;;  %v1886_v1 = vpop.f32.mrb[65].mxu0 }
 0x774   :  { %v1887_v16 = vadd.f32 %v1886_v1, %v4431_v62 }
 0x775   :  { %3733 = vtanh.f32 %v1892_v14 }
 0x776   :  { %3735 = vtanh.f32 %v1887_v16  ;;  %v3160_v62 = vpop.f32.mrb[66].mxu0 }
 0x777   :  { %v1896_v61 = vpop.f32.mrb[67].mxu0 }
 0x77a   :  { %v3163_v17 = vpop.f32.mrb[68].mxu0 }
 0x77b   :  { %v1906_v38 = vpop.f32.mrb[69].mxu0 }
 0x77e   :  { %v3166_v29 = vpop.f32.mrb[70].mxu0 }
 0x77f   :  { %v3734_v48 = vpop.eup %3733  ;;  %v1916_v57 = vpop.f32.mrb[71].mxu0 }
 0x780   :  { %v3736_v22 = vpop.eup %3735 }
 0x781   :  { %v2030_v8 = vadd.f32 %v3736_v22, %v3734_v48 }
 0x782   :  { %v3169_v36 = vpop.f32.mrb[72].mxu0 }
 0x783   :  { %v2045_v31 = vrot.slane %v2030_v8, 4  ;;  %v1926_v51 = vpop.f32.mrb[73].mxu0 }
 0x785   :  { %v2046_v12 = vadd.f32 %v2045_v31, %v2030_v8 }
 0x786   :  { %v3172_v25 = vpop.f32.mrb[74].mxu0 }
 0x787   :  { %v2047_v41 = vrot.slane %v2046_v12, 2  ;;  %v1936_v18 = vpop.f32.mrb[75].mxu0 }
 0x789   :  { %v2048_v15 = vadd.f32 %v2047_v41, %v2046_v12 }
 0x78a   :  { %v3175_v28 = vpop.f32.mrb[76].mxu0 }
 0x78b   :  { %v2049_v59 = vrot.slane %v2048_v15, 1  ;;  %v1946_v11 = vpop.f32.mrb[77].mxu0 }
 0x78d   :  { %v2050_v49 = vadd.f32 %v2049_v59, %v2048_v15 }
 0x78e   :  { %v3178_v19 = vpop.f32.mrb[78].mxu0 }
 0x78f   :  { %v2272_v24 = vmul.f32 -0.0625, %v2050_v49  ;;  %v1956_v21 = vpop.f32.mrb[79].mxu0 }
 0x791   :  { %v2054_v0 = vmul.f32 1.442695, %v2272_v24 }
 0x793   :  { %3737 = vpow2.f32 %v2054_v0 }
 0x79d   :  { %v3738_v10 = vpop.eup %3737 }
 0x79e   :  { %v2056_v2 = vadd.f32 1.0, %v3738_v10 }
 0x7a0   :  { %3739 = vrcp.f32 %v2056_v2 }
 0x7aa   :  { %v3740_v56 = vpop.eup %3739 }
 0x7ab   :  { %3212 = vmatmul.mubr.f32.vlgmr.msra.gmra.mrb[80].mxu1 %v3740_v56  ;;  %3247 = vmatmul.mubr.f32.vlgmr.msra.gmra.mrb[80].mxu0 %v3740_v56 }
 0x87e   :  { %v2142_v35 = vpop.f32.mrb[80].mxu1  ;;  %v2230_v20 = vpop.f32.mrb[80].mxu0 }
 0x87f   :  { %v2143_v32 = vadd.f32 %v2142_v35, %v2075_v34  ;;  %v2231_v37 = vadd.f32 %v2230_v20, %v2163_v7  ;;  %v3213_v42 = vpop.f32.mrb[81].mxu1  ;;  %v3248_v43 = vpop.f32.mrb[81].mxu0 }
 0x881   :  { %2146 = vst [vmem:[#allocation20] sm:$0x1] %v2143_v32  ;;  %2234 = vst [vmem:[#allocation21] sm:$0x1] %v2231_v37 }
 0x882   :  { %3994 = shalt.err (!%p3991_p8)
}
 0x883   :  { %s4654_s6 = sld [smem:[#allocation33_spill]] }
 0x889   :  { %s3995_s19 = scalar_lea.hbm %s4654_s6, 16 }
 0x88a   :  { %p3996_p9 = scmp.ne.s32.totalorder %s4654_s6, %s3995_s19  ;;  %p3999_p10 = scmp.lt.u32.totalorder %s3995_s19, %s4654_s6 }
 0x88c   :  { %p4001_p11 = pnand %p3999_p10, %p3996_p9 }
 0x88e   :  { %4004 = shalt.err (!%p4001_p11)
}
 0x88f   :  { %2244 = dma.vmem_to_hbm [thread:$0]  %s2242_s8, 16, %s4654_s6, [#allocation4]  }
 0x890   :  { %s4005_s26 = scalar_lea.vmem %s4594_s0, 16  ;;  %s4009_s4 = scalar_lea.vmem %s4594_s0, 32 }
 0x891   :  { %p4006_p12 = scmp.ne.s32.totalorder %s4594_s0, %s4005_s26  ;;  %p4010_p13 = scmp.lt.s32.totalorder %s4594_s0, %s4594_s0 }
 0x892   :  { %p4011_p0 = scmp.lt.s32.totalorder %s4009_s4, %s4005_s26 }
 0x894   :  { %p4012_p1 = por %p4011_p0, %p4010_p13 }
 0x896   :  { %p4013_p2 = pnand %p4012_p1, %p4006_p12 }
 0x898   :  { %4016 = shalt.err (!%p4013_p2)
}
 0x899   :  { %s4655_s25 = sld [smem:[#allocation34_spill]] }
 0x89f   :  { %s4017_s14 = scalar_lea.hbm %s4655_s25, 16 }
 0x8a0   :  { %p4018_p3 = scmp.ne.s32.totalorder %s4655_s25, %s4017_s14  ;;  %p4021_p4 = scmp.lt.u32.totalorder %s4017_s14, %s4655_s25 }
 0x8a2   :  { %p4023_p5 = pnand %p4021_p4, %p4018_p3 }
 0x8a4   :  { %4026 = shalt.err (!%p4023_p5)
}
 0x8a5   :  { %2254 = dma.vmem_to_hbm [thread:$0]  %s4594_s0, 16, %s4655_s25, [#allocation22]  }
 0x8a6   :  { %4039 = dma.done.wait [#allocation4], 16  }
 0x8a7   :  { %4040 = vsyncadd [#allocation4], 4294967280 }
 0x8a8   :  { %4041 = dma.done.wait [#allocation22], 16  }
 0x8a9   :  { %4042 = vsyncadd [#allocation22], 4294967280 }
 0x8aa   :  { %2261 = vsyncpa [#allocation3], 1 }
 0x8ab   :  { %2262 = vsyncpa [#allocation6], 1 }
 0x8ac   :  { %2263 = vsyncpa [#allocation9], 1 }
 0x8ad   :  { %2264 = vsyncpa [#allocation12], 1 }
 0x8ae   :  { %2265 = vsyncpa [#allocation15], 1 }
 0x8af   :  { %2266 = vsyncpa [#allocation18], 1 }
 0x8b0   :  { %2267 = vsyncpa [#allocation4], 1 }
 0x8b1   :  { %2268 = vsyncpa [#allocation22], 1 }

</bundles_post_ra>
